<compile_context>
chip_gen: v7x
topology: tpu7x:2x2x1
jax: 0.10.0
libtpu: 0.0.40
codegen_flags: <defaults>
</compile_context>

<pallas_src>
import jax
import jax.numpy as jnp
import numpy as np
from jax import lax
from jax.experimental import pallas as pl
from jax.experimental.pallas import tpu as pltpu

CIN, COUT, KH, KW = 16, 256, 3, 3
KDIM = KH * KW * CIN          # 144 = im2col contraction size
EPS = 1e-5


def _input_block_kernel(x_ref, w_ref, g_ref, be_ref, out_ref,
                        conv_buf, sum_ref, ssq_ref, sem):
    """One grid step = one block of NB images (axis is 'arbitrary': carries stats).

    x_ref   : (NB*HW, 144) bf16  im2col'd activations for this image block
    w_ref   : (144, 256)   bf16  conv weights, taps flattened (kh, kw, cin)
    g_ref   : (1, 256)     f32   BN gamma
    be_ref  : (1, 256)     f32   BN beta
    out_ref : (N*HW, 256)  f32   raw HBM output (memory_space=ANY, manual DMA)
    conv_buf: VMEM (N*HW, 256) f32  conv results, resident across the grid
    sum_ref/ssq_ref : VMEM (1, 256) f32  per-channel sum / sum-of-squares of the
                      bias-free conv output (BatchNorm batch statistics)
    sem     : DMA semaphore for the single epilogue writeback copy
    """
    blk = pl.program_id(0)
    nblk = pl.num_programs(0)
    rows = x_ref.shape[0]          # NB*HW (static)

    @pl.when(blk == 0)
    def _():
        sum_ref[...] = jnp.zeros_like(sum_ref)
        ssq_ref[...] = jnp.zeros_like(ssq_ref)

    # One fat MXU matmul for the whole image block: (NB*HW, 144) @ (144, 256) -> f32.
    acc = jnp.dot(x_ref[...], w_ref[...], preferred_element_type=jnp.float32)

    # Batch statistics on the bias-free output (bias cancels inside BatchNorm).
    sum_ref[...] += jnp.sum(acc, axis=0, keepdims=True)
    ssq_ref[...] += jnp.sum(acc * acc, axis=0, keepdims=True)

    # Keep the conv output resident in VMEM (no HBM round trip before BN).
    start = pl.multiple_of(blk * rows, 8)
    conv_buf[pl.ds(start, rows), :] = acc

    # Epilogue after the last block: BN (batch stats) + ReLU, one DMA to HBM.
    @pl.when(blk == nblk - 1)
    def _():
        m = jnp.float32(conv_buf.shape[0])                 # N*HW
        mu = sum_ref[...] / m
        var = jnp.maximum(ssq_ref[...] / m - mu * mu, 0.0)  # clamp cancellation
        scale = g_ref[...] * lax.rsqrt(var + EPS)
        shift = be_ref[...] - mu * scale
        # Single vectorized pass; scale/shift broadcast emitted exactly once.
        conv_buf[...] = jnp.maximum(conv_buf[...] * scale + shift, 0.0)
        cp = pltpu.make_async_copy(conv_buf, out_ref, sem)
        cp.start()
        cp.wait()


def input_block_forward(x_nchw, w_hwio, b, gamma, beta):
    """Forward of InputBlock (training-mode BatchNorm, biased variance), NCHW in/out.

    The conv bias `b` is accepted for interface parity with the PyTorch module but is
    not passed to the kernel: a bias added before BatchNorm cancels exactly in
    (x - mean), so dropping it is output-equivalent and cheaper.
    """
    del b  # mathematical no-op before BatchNorm
    N, _, H, W = x_nchw.shape
    HW = H * W

    # NCHW -> NHWC, cast to bf16 *before* the im2col expansion (halves HBM traffic),
    # zero pad for 'same', im2col to a flat (N*HW, 144) slab with (kh, kw, cin) order.
    x = jnp.transpose(x_nchw, (0, 2, 3, 1)).astype(jnp.bfloat16)
    xp = jnp.pad(x, ((0, 0), (1, 1), (1, 1), (0, 0)))
    patches = jnp.concatenate(
        [xp[:, kh:kh + H, kw:kw + W, :] for kh in range(KH) for kw in range(KW)],
        axis=-1)                                              # (N, H, W, 144)
    xcat = patches.reshape(N * HW, KDIM)
    wmat = w_hwio.reshape(KDIM, COUT).astype(jnp.bfloat16)    # matches (kh,kw,cin)
    g2 = gamma.reshape(1, COUT).astype(jnp.float32)
    be2 = beta.reshape(1, COUT).astype(jnp.float32)

    # Images per grid step: largest divisor of N whose bf16 input tile fits the budget.
    tile_budget = 8 << 20
    nb = N
    while nb > 1 and nb * HW * KDIM * 2 > tile_budget:
        nb -= 1
        while N % nb:
            nb -= 1
    nblk = N // nb

    # Explicit VMEM budget: batch-resident conv buffer + double-buffered input tile +
    # weights + small stats/params; guarded against the physical ceiling.
    conv_bytes = N * HW * COUT * 4
    x_blk_bytes = 2 * nb * HW * KDIM * 2
    w_bytes = 2 * KDIM * COUT * 2
    needed = conv_bytes + x_blk_bytes + w_bytes + (1 << 20)
    if needed > (96 << 20):
        raise ValueError(
            f"InputBlock fused kernel needs ~{needed >> 20} MiB VMEM; "
            "exceeds budget - use a row-tiled two-pass variant for these sizes.")
    vmem_limit = int(min(max(32 << 20, needed + (8 << 20)), 127 << 20))

    y = pl.pallas_call(
        _input_block_kernel,
        out_shape=jax.ShapeDtypeStruct((N * HW, COUT), jnp.float32),
        grid=(nblk,),
        in_specs=[
            pl.BlockSpec((nb * HW, KDIM), lambda i: (i, 0)),
            pl.BlockSpec((KDIM, COUT), lambda i: (0, 0)),
            pl.BlockSpec((1, COUT), lambda i: (0, 0)),
            pl.BlockSpec((1, COUT), lambda i: (0, 0)),
        ],
        out_specs=pl.BlockSpec(memory_space=pl.ANY),   # raw HBM ref, manual DMA out
        scratch_shapes=[
            pltpu.VMEM((N * HW, COUT), jnp.float32),   # conv results, batch-resident
            pltpu.VMEM((1, COUT), jnp.float32),        # per-channel sum
            pltpu.VMEM((1, COUT), jnp.float32),        # per-channel sum of squares
            pltpu.SemaphoreType.DMA(()),
        ],
        compiler_params=pltpu.CompilerParams(
            # Stats / conv_buf carry across the batch-block axis -> sequential.
            dimension_semantics=("arbitrary",),
            vmem_limit_bytes=vmem_limit),
    )(xcat, wmat, g2, be2)

    # Module returns NCHW.
    return jnp.transpose(y.reshape(N, H, W, COUT), (0, 3, 1, 2))


if __name__ == "__main__":
    key = jax.random.PRNGKey(0)
    kx, kw, kb, kg, kbe = jax.random.split(key, 5)

    N, H, W = 2, 16, 16
    x = jax.random.normal(kx, (N, CIN, H, W), dtype=jnp.float32)
    # Deterministic synthetic parameters (shapes implied by the module __init__).
    w_hwio = jax.random.normal(kw, (KH, KW, CIN, COUT), dtype=jnp.float32) / 12.0
    b = 0.05 * jax.random.normal(kb, (COUT,), dtype=jnp.float32)
    gamma = 1.0 + 0.1 * jax.random.normal(kg, (COUT,), dtype=jnp.float32)
    beta = 0.1 * jax.random.normal(kbe, (COUT,), dtype=jnp.float32)

    out = jax.jit(input_block_forward)(x, w_hwio, b, gamma, beta)
    out = jax.block_until_ready(out)

    # Pure-JAX reference.  The kernel feeds the MXU bf16 activations/weights (f32
    # accumulation), so the reference uses the same bf16-rounded inputs; everything
    # else (conv + bias, batch stats, BN, ReLU) is exact f32.  The reference keeps the
    # conv bias, which verifies that dropping it in the kernel is output-equivalent.
    xb = x.astype(jnp.bfloat16).astype(jnp.float32)
    wb = w_hwio.astype(jnp.bfloat16).astype(jnp.float32)
    w_oihw = jnp.transpose(wb, (3, 2, 0, 1))
    ref_conv = lax.conv_general_dilated(
        xb, w_oihw, window_strides=(1, 1), padding="SAME",
        dimension_numbers=("NCHW", "OIHW", "NCHW")) + b[None, :, None, None]
    mu = ref_conv.mean(axis=(0, 2, 3), keepdims=True)
    va = ref_conv.var(axis=(0, 2, 3), keepdims=True)          # biased, as PyTorch BN
    ref = jnp.maximum(
        (ref_conv - mu) * (gamma[None, :, None, None] / jnp.sqrt(va + EPS))
        + beta[None, :, None, None], 0.0)

    if not np.allclose(np.asarray(out), np.asarray(ref), atol=2e-3, rtol=2e-3):
        raise AssertionError("Pallas InputBlock does not match reference")
    print("KERNEL_OK")
</pallas_src>

<mosaic_0001>
module attributes {stable_mosaic.version = 11 : i64} {
  func.func @_input_block_kernel(%arg0: i32, %arg1: memref<512x144xbf16, #tpu.memory_space<vmem>>, %arg2: memref<144x256xbf16, #tpu.memory_space<vmem>>, %arg3: memref<1x256xf32, #tpu.memory_space<vmem>>, %arg4: memref<1x256xf32, #tpu.memory_space<vmem>>, %arg5: memref<512x256xf32, #tpu.memory_space<any>>, %arg6: memref<512x256xf32, #tpu.memory_space<vmem>>, %arg7: memref<1x256xf32, #tpu.memory_space<vmem>>, %arg8: memref<1x256xf32, #tpu.memory_space<vmem>>, %arg9: memref<!tpu.dma_semaphore, #tpu.memory_space<semaphore_mem>>) attributes {dimension_semantics = [#tpu.dimension_semantics<arbitrary>], iteration_bounds = array<i64: 1>, scalar_prefetch = 0 : i64, scratch_operands = 4 : i64, tpu.core_type = #tpu.core_type<tc>, window_params = [{transform_indices = @transform_0, window_bounds = array<i64: 512, 144>}, {pipeline_mode = #tpu.pipeline_mode<synchronous>, transform_indices = @transform_1, window_bounds = array<i64: 144, 256>}, {pipeline_mode = #tpu.pipeline_mode<synchronous>, transform_indices = @transform_2, window_bounds = array<i64: 1, 256>}, {pipeline_mode = #tpu.pipeline_mode<synchronous>, transform_indices = @transform_3, window_bounds = array<i64: 1, 256>}, {}]} {
    %c0_i32 = arith.constant 0 : i32
    %0 = arith.cmpi eq, %arg0, %c0_i32 : i32
    %1 = arith.extui %0 : i1 to i32
    %c0_i32_0 = arith.constant 0 : i32
    %2 = arith.cmpi ne, %1, %c0_i32_0 : i32
    scf.if %2 {
      %cst_17 = arith.constant 0.000000e+00 : f32
      %24 = vector.broadcast %cst_17 : f32 to vector<1x256xf32>
      %c0_18 = arith.constant 0 : index
      %c0_19 = arith.constant 0 : index
      %25 = vector.load %arg7[%c0_18, %c0_19] : memref<1x256xf32, #tpu.memory_space<vmem>>, vector<1x256xf32>
      tpu.vector_store %arg7[%c0_18, %c0_19], %24 {strides = array<i32>} : memref<1x256xf32, #tpu.memory_space<vmem>>, vector<1x256xf32>,
      %cst_20 = arith.constant 0.000000e+00 : f32
      %26 = vector.broadcast %cst_20 : f32 to vector<1x256xf32>
      %c0_21 = arith.constant 0 : index
      %c0_22 = arith.constant 0 : index
      %27 = vector.load %arg8[%c0_21, %c0_22] : memref<1x256xf32, #tpu.memory_space<vmem>>, vector<1x256xf32>
      tpu.vector_store %arg8[%c0_21, %c0_22], %26 {strides = array<i32>} : memref<1x256xf32, #tpu.memory_space<vmem>>, vector<1x256xf32>,
    } else {
    }
    %c0 = arith.constant 0 : index
    %c0_1 = arith.constant 0 : index
    %3 = vector.load %arg1[%c0, %c0_1] : memref<512x144xbf16, #tpu.memory_space<vmem>>, vector<512x144xbf16>
    %c0_2 = arith.constant 0 : index
    %c0_3 = arith.constant 0 : index
    %4 = vector.load %arg2[%c0_2, %c0_3] : memref<144x256xbf16, #tpu.memory_space<vmem>>, vector<144x256xbf16>
    %cst = arith.constant dense<0.000000e+00> : vector<512x256xf32>
    %5 = tpu.matmul %3, %4, %cst {dimension_numbers = #tpu.dot_dimension_numbers<[1], [0], [0], [1], [0, 0, 1, 1], [], []>} : vector<512x144xbf16>, vector<144x256xbf16>, vector<512x256xf32> -> vector<512x256xf32>
    %c0_4 = arith.constant 0 : index
    %c0_5 = arith.constant 0 : index
    %6 = vector.load %arg7[%c0_4, %c0_5] : memref<1x256xf32, #tpu.memory_space<vmem>>, vector<1x256xf32>
    %cst_6 = arith.constant dense<0.000000e+00> : vector<256xf32>
    %7 = vector.multi_reduction <add>, %5, %cst_6 [0] : vector<512x256xf32> to vector<256xf32>
    %8 = vector.shape_cast %7 : vector<256xf32> to vector<1x256xf32>
    %9 = arith.addf %6, %8 : vector<1x256xf32>
    %c0_7 = arith.constant 0 : index
    %c0_8 = arith.constant 0 : index
    %10 = vector.load %arg7[%c0_7, %c0_8] : memref<1x256xf32, #tpu.memory_space<vmem>>, vector<1x256xf32>
    tpu.vector_store %arg7[%c0_7, %c0_8], %9 {strides = array<i32>} : memref<1x256xf32, #tpu.memory_space<vmem>>, vector<1x256xf32>,
    %c0_9 = arith.constant 0 : index
    %c0_10 = arith.constant 0 : index
    %11 = vector.load %arg8[%c0_9, %c0_10] : memref<1x256xf32, #tpu.memory_space<vmem>>, vector<1x256xf32>
    %12 = arith.mulf %5, %5 : vector<512x256xf32>
    %cst_11 = arith.constant dense<0.000000e+00> : vector<256xf32>
    %13 = vector.multi_reduction <add>, %12, %cst_11 [0] : vector<512x256xf32> to vector<256xf32>
    %14 = vector.shape_cast %13 : vector<256xf32> to vector<1x256xf32>
    %15 = arith.addf %11, %14 : vector<1x256xf32>
    %c0_12 = arith.constant 0 : index
    %c0_13 = arith.constant 0 : index
    %16 = vector.load %arg8[%c0_12, %c0_13] : memref<1x256xf32, #tpu.memory_space<vmem>>, vector<1x256xf32>
    tpu.vector_store %arg8[%c0_12, %c0_13], %15 {strides = array<i32>} : memref<1x256xf32, #tpu.memory_space<vmem>>, vector<1x256xf32>,
    %c512_i32 = arith.constant 512 : i32
    %17 = arith.muli %arg0, %c512_i32 : i32
    %18 = tpu.assume_multiple %17, 8 : i32
    %19 = arith.index_cast %18 : i32 to index
    %c0_14 = arith.constant 0 : index
    %20 = vector.load %arg6[%19, %c0_14] : memref<512x256xf32, #tpu.memory_space<vmem>>, vector<512x256xf32>
    tpu.vector_store %arg6[%19, %c0_14], %5 {strides = array<i32>} : memref<512x256xf32, #tpu.memory_space<vmem>>, vector<512x256xf32>,
    %c0_i32_15 = arith.constant 0 : i32
    %21 = arith.cmpi eq, %arg0, %c0_i32_15 : i32
    %22 = arith.extui %21 : i1 to i32
    %c0_i32_16 = arith.constant 0 : i32
    %23 = arith.cmpi ne, %22, %c0_i32_16 : i32
    scf.if %23 {
      %c0_17 = arith.constant 0 : index
      %c0_18 = arith.constant 0 : index
      %24 = vector.load %arg7[%c0_17, %c0_18] : memref<1x256xf32, #tpu.memory_space<vmem>>, vector<1x256xf32>
      %cst_19 = arith.constant 5.120000e+02 : f32
      %25 = vector.broadcast %cst_19 : f32 to vector<1x256xf32>
      %26 = arith.divf %24, %25 : vector<1x256xf32>
      %c0_20 = arith.constant 0 : index
      %c0_21 = arith.constant 0 : index
      %27 = vector.load %arg8[%c0_20, %c0_21] : memref<1x256xf32, #tpu.memory_space<vmem>>, vector<1x256xf32>
      %cst_22 = arith.constant 5.120000e+02 : f32
      %28 = vector.broadcast %cst_22 : f32 to vector<1x256xf32>
      %29 = arith.divf %27, %28 : vector<1x256xf32>
      %30 = arith.mulf %26, %26 : vector<1x256xf32>
      %31 = arith.subf %29, %30 : vector<1x256xf32>
      %cst_23 = arith.constant 0.000000e+00 : f32
      %32 = vector.broadcast %cst_23 : f32 to vector<1x256xf32>
      %33 = arith.maximumf %31, %32 : vector<1x256xf32>
      %c0_24 = arith.constant 0 : index
      %c0_25 = arith.constant 0 : index
      %34 = vector.load %arg3[%c0_24, %c0_25] : memref<1x256xf32, #tpu.memory_space<vmem>>, vector<1x256xf32>
      %cst_26 = arith.constant 9.99999974E-6 : f32
      %35 = vector.broadcast %cst_26 : f32 to vector<1x256xf32>
      %36 = arith.addf %33, %35 : vector<1x256xf32>
      %37 = math.rsqrt %36 : vector<1x256xf32>
      %38 = arith.mulf %34, %37 : vector<1x256xf32>
      %c0_27 = arith.constant 0 : index
      %c0_28 = arith.constant 0 : index
      %39 = vector.load %arg4[%c0_27, %c0_28] : memref<1x256xf32, #tpu.memory_space<vmem>>, vector<1x256xf32>
      %40 = arith.mulf %26, %38 : vector<1x256xf32>
      %41 = arith.subf %39, %40 : vector<1x256xf32>
      %c0_29 = arith.constant 0 : index
      %c0_30 = arith.constant 0 : index
      %42 = vector.load %arg6[%c0_29, %c0_30] : memref<512x256xf32, #tpu.memory_space<vmem>>, vector<512x256xf32>
      %43 = vector.broadcast %38 : vector<1x256xf32> to vector<512x256xf32>
      %44 = arith.mulf %42, %43 : vector<512x256xf32>
      %45 = vector.broadcast %41 : vector<1x256xf32> to vector<512x256xf32>
      %46 = arith.addf %44, %45 : vector<512x256xf32>
      %cst_31 = arith.constant 0.000000e+00 : f32
      %47 = vector.broadcast %cst_31 : f32 to vector<512x256xf32>
      %48 = arith.maximumf %46, %47 : vector<512x256xf32>
      %c0_32 = arith.constant 0 : index
      %c0_33 = arith.constant 0 : index
      %49 = vector.load %arg6[%c0_32, %c0_33] : memref<512x256xf32, #tpu.memory_space<vmem>>, vector<512x256xf32>
      tpu.vector_store %arg6[%c0_32, %c0_33], %48 {strides = array<i32>} : memref<512x256xf32, #tpu.memory_space<vmem>>, vector<512x256xf32>,
      tpu.enqueue_dma source(%arg6 : memref<512x256xf32, #tpu.memory_space<vmem>>) target(%arg5 : memref<512x256xf32, #tpu.memory_space<any>>) target_semaphore(%arg9 : memref<!tpu.dma_semaphore, #tpu.memory_space<semaphore_mem>>)
      tpu.wait_dma2 semaphore(%arg9 : memref<!tpu.dma_semaphore, #tpu.memory_space<semaphore_mem>>) src(%arg6 : memref<512x256xf32, #tpu.memory_space<vmem>>) dst(%arg5 : memref<512x256xf32, #tpu.memory_space<any>>)
    } else {
    }
    return
  }
  func.func @transform_0(%arg0: i32) -> (i32, i32) {
    %c0_i32 = arith.constant 0 : i32
    %c0_i32_0 = arith.constant 0 : i32
    return %arg0, %c0_i32 : i32, i32
  }
  func.func @transform_1(%arg0: i32) -> (i32, i32) {
    %c0_i32 = arith.constant 0 : i32
    %c0_i32_0 = arith.constant 0 : i32
    %c0_i32_1 = arith.constant 0 : i32
    return %c0_i32, %c0_i32_0 : i32, i32
  }
  func.func @transform_2(%arg0: i32) -> (i32, i32) {
    %c0_i32 = arith.constant 0 : i32
    %c0_i32_0 = arith.constant 0 : i32
    %c0_i32_1 = arith.constant 0 : i32
    return %c0_i32, %c0_i32_0 : i32, i32
  }
  func.func @transform_3(%arg0: i32) -> (i32, i32) {
    %c0_i32 = arith.constant 0 : i32
    %c0_i32_0 = arith.constant 0 : i32
    %c0_i32_1 = arith.constant 0 : i32
    return %c0_i32, %c0_i32_0 : i32, i32
  }
}

</mosaic_0001>

<bundles_post_ra>
// kernel: input_block_forward.1
= control target key start
LH: loop header
LB: loop body
LE: loop exit
PB: predicated region body
PF: predicated region fallthrough
CT: control target
= control target key end

     0   :  { %vm488_vm0 = vcmask 130048   ;;  %s4642_s1 = inlined_call_operand.vmem [shape: bf16[144,256], index: 1, kind: input, shape index: {}]   ;;  %s4643_s0 = inlined_call_operand.vmem [shape: bf16[512,144], index: 0, kind: input, shape index: {}]   ;;  %s4644_s2 = inlined_call_operand.vmem [shape: f32[1,256], index: 2, kind: input, shape index: {}]   ;;  %s4645_s3 = inlined_call_operand.vmem [shape: f32[1,256], index: 3, kind: input, shape index: {}]   ;;  %s4646_s4 = inlined_call_operand.hbm [shape: f32[512,256], index: 4, kind: output, shape index: {}]  }
   0x1   :  { %v2361_v0 = vld [vmem:[%s4642_s1 + $0x4] ss:$8 sps:$4 sm:$0xff]   ;;  %v2363_v1 = vld [vmem:[%s4642_s1] ss:$8 sps:$4 sm:$0xff]   ;;  %v2364_v2 = vld [vmem:[%s4642_s1 + $0x14] ss:$8 sps:$4 sm:$0xff]  }
   0x2   :  { %585 = vmatprep.subr.bf16.mxu0 %v2361_v0  ;;  %2340 = vmatprep.subr.bf16.mxu1 %v2361_v0  ;;  %v2366_v3 = vld [vmem:[%s4642_s1 + $0x10] ss:$8 sps:$4 sm:$0xff]   ;;  %v2367_v4 = vld [vmem:[%s4642_s1 + $0x24] ss:$8 sps:$4 sm:$0xff]   ;;  %v2369_v5 = vld [vmem:[%s4642_s1 + $0x20] ss:$8 sps:$4 sm:$0xff]  }
   0x3   :  { %586 = vmatpush1.bf16.msra.mxu0 %v2363_v1  ;;  %2349 = vmatpush1.bf16.msra.mxu1 %v2363_v1  ;;  %v2370_v6 = vld [vmem:[%s4642_s1 + $0x34] ss:$8 sps:$4 sm:$0xff]   ;;  %v2372_v7 = vld [vmem:[%s4642_s1 + $0x30] ss:$8 sps:$4 sm:$0xff]   ;;  %v2373_v8 = vld [vmem:[%s4642_s1 + $0x44] ss:$8 sps:$4 sm:$0xff]  }
   0x4   :  { %587 = vmatprep.subr.bf16.mxu0 %v2364_v2  ;;  %2341 = vmatprep.subr.bf16.mxu1 %v2364_v2  ;;  %v2390_v9 = vld [vmem:[%s4643_s0 + $0x4] ss:$8 sps:$4 sm:$0xff]   ;;  %v2375_v10 = vld [vmem:[%s4642_s1 + $0x40] ss:$8 sps:$4 sm:$0xff]   ;;  %v2376_v11 = vld [vmem:[%s4642_s1 + $0x54] ss:$8 sps:$4 sm:$0xff]  }
   0x5   :  { %2307 = vmatprep.mubr.msk.bf16.mxu0 %vm488_vm0, %v2390_v9  ;;  %v2378_v12 = vld [vmem:[%s4642_s1 + $0x50] ss:$8 sps:$4 sm:$0xff]   ;;  %v2379_v13 = vld [vmem:[%s4642_s1 + $0x64] ss:$8 sps:$4 sm:$0xff]   ;;  %v2381_v14 = vld [vmem:[%s4642_s1 + $0x60] ss:$8 sps:$4 sm:$0xff]  }
   0x6   :  { %v2414_v15 = vld [vmem:[%s4643_s0 + $0x104] ss:$8 sps:$4 sm:$0xff]   ;;  %v2382_v16 = vld [vmem:[%s4642_s1 + $0x74] ss:$8 sps:$4 sm:$0xff]   ;;  %v2384_v17 = vld [vmem:[%s4642_s1 + $0x70] ss:$8 sps:$4 sm:$0xff]  }
   0x7   :  { %588 = vmatpush1.bf16.msra.mxu0 %v2366_v3  ;;  %2350 = vmatpush1.bf16.msra.mxu1 %v2366_v3  ;;  %v2385_v18 = vld [vmem:[%s4642_s1 + $0x84] ss:$8 sps:$4 sm:$0xff]   ;;  %v2387_v19 = vld [vmem:[%s4642_s1 + $0x80] ss:$8 sps:$4 sm:$0xff]   ;;  %v2391_v21 = vld [vmem:[%s4643_s0 + $0x14] ss:$8 sps:$4 sm:$0xff]  }
   0x8   :  { %589 = vmatprep.subr.bf16.mxu0 %v2367_v4  ;;  %2342 = vmatprep.subr.bf16.mxu1 %v2367_v4  ;;  %v2388_v20 = vld [vmem:[%s4643_s0] ss:$8 sps:$4 sm:$0xff]   ;;  %v2418_v23 = vld [vmem:[%s4643_s0 + $0x114] ss:$8 sps:$4 sm:$0xff]   ;;  %v2393_v24 = vld [vmem:[%s4643_s0 + $0x10] ss:$8 sps:$4 sm:$0xff]  }
   0x9   :  { %2323 = vmatprep.mubr.msk.bf16.mxu1 %vm488_vm0, %v2414_v15  ;;  %v2412_v22 = vld [vmem:[%s4643_s0 + $0x100] ss:$8 sps:$4 sm:$0xff]   ;;  %v2394_v25 = vld [vmem:[%s4643_s0 + $0x24] ss:$8 sps:$4 sm:$0xff]   ;;  %v2420_v26 = vld [vmem:[%s4643_s0 + $0x110] ss:$8 sps:$4 sm:$0xff]  }
   0xa   :  { %v2424_v27 = vld [vmem:[%s4643_s0 + $0x124] ss:$8 sps:$4 sm:$0xff]   ;;  %v2396_v28 = vld [vmem:[%s4643_s0 + $0x20] ss:$8 sps:$4 sm:$0xff]   ;;  %v2397_v29 = vld [vmem:[%s4643_s0 + $0x34] ss:$8 sps:$4 sm:$0xff]  }
   0xb   :  { %590 = vmatpush1.bf16.msra.mxu0 %v2369_v5  ;;  %2351 = vmatpush1.bf16.msra.mxu1 %v2369_v5  ;;  %v2426_v30 = vld [vmem:[%s4643_s0 + $0x120] ss:$8 sps:$4 sm:$0xff]   ;;  %v2430_v31 = vld [vmem:[%s4643_s0 + $0x134] ss:$8 sps:$4 sm:$0xff]   ;;  %v2399_v32 = vld [vmem:[%s4643_s0 + $0x30] ss:$8 sps:$4 sm:$0xff]  }
   0xc   :  { %591 = vmatprep.subr.bf16.mxu0 %v2370_v6  ;;  %2343 = vmatprep.subr.bf16.mxu1 %v2370_v6  ;;  %v2400_v33 = vld [vmem:[%s4643_s0 + $0x44] ss:$8 sps:$4 sm:$0xff]   ;;  %v2432_v34 = vld [vmem:[%s4643_s0 + $0x130] ss:$8 sps:$4 sm:$0xff]   ;;  %v2402_v36 = vld [vmem:[%s4643_s0 + $0x40] ss:$8 sps:$4 sm:$0xff]  }
   0xd   :  { %v2436_v35 = vld [vmem:[%s4643_s0 + $0x144] ss:$8 sps:$4 sm:$0xff]   ;;  %v2403_v37 = vld [vmem:[%s4643_s0 + $0x54] ss:$8 sps:$4 sm:$0xff]   ;;  %v2438_v38 = vld [vmem:[%s4643_s0 + $0x140] ss:$8 sps:$4 sm:$0xff]  }
   0xe   :  { %v2442_v39 = vld [vmem:[%s4643_s0 + $0x154] ss:$8 sps:$4 sm:$0xff]   ;;  %v2405_v40 = vld [vmem:[%s4643_s0 + $0x50] ss:$8 sps:$4 sm:$0xff]   ;;  %v2406_v41 = vld [vmem:[%s4643_s0 + $0x64] ss:$8 sps:$4 sm:$0xff]  }
   0xf   :  { %592 = vmatpush1.bf16.msra.mxu0 %v2372_v7  ;;  %2352 = vmatpush1.bf16.msra.mxu1 %v2372_v7  ;;  %v2444_v42 = vld [vmem:[%s4643_s0 + $0x150] ss:$8 sps:$4 sm:$0xff]   ;;  %v2448_v43 = vld [vmem:[%s4643_s0 + $0x164] ss:$8 sps:$4 sm:$0xff]   ;;  %v2408_v44 = vld [vmem:[%s4643_s0 + $0x60] ss:$8 sps:$4 sm:$0xff]  }
  0x10   :  { %593 = vmatprep.subr.bf16.mxu0 %v2373_v8  ;;  %2344 = vmatprep.subr.bf16.mxu1 %v2373_v8  ;;  %v2409_v45 = vld [vmem:[%s4643_s0 + $0x74] ss:$8 sps:$4 sm:$0xff]   ;;  %v2450_v46 = vld [vmem:[%s4643_s0 + $0x160] ss:$8 sps:$4 sm:$0xff]   ;;  %v2411_v48 = vld [vmem:[%s4643_s0 + $0x70] ss:$8 sps:$4 sm:$0xff]  }
  0x11   :  { %v2454_v47 = vld [vmem:[%s4643_s0 + $0x174] ss:$8 sps:$4 sm:$0xff]   ;;  %v2415_v49 = vld [vmem:[%s4643_s0 + $0x84] ss:$8 sps:$4 sm:$0xff]   ;;  %v2456_v50 = vld [vmem:[%s4643_s0 + $0x170] ss:$8 sps:$4 sm:$0xff]  }
  0x12   :  { %v2460_v51 = vld [vmem:[%s4643_s0 + $0x184] ss:$8 sps:$4 sm:$0xff]   ;;  %v2417_v52 = vld [vmem:[%s4643_s0 + $0x80] ss:$8 sps:$4 sm:$0xff]   ;;  %v2421_v53 = vld [vmem:[%s4643_s0 + $0x94] ss:$8 sps:$4 sm:$0xff]  }
  0x13   :  { %594 = vmatpush1.bf16.msra.mxu0 %v2375_v10  ;;  %2353 = vmatpush1.bf16.msra.mxu1 %v2375_v10  ;;  %v2462_v54 = vld [vmem:[%s4643_s0 + $0x180] ss:$8 sps:$4 sm:$0xff]   ;;  %v2463_v55 = vld [vmem:[%s4643_s0 + $0x194] ss:$8 sps:$4 sm:$0xff]   ;;  %v2423_v56 = vld [vmem:[%s4643_s0 + $0x90] ss:$8 sps:$4 sm:$0xff]  }
  0x14   :  { %595 = vmatprep.subr.bf16.mxu0 %v2376_v11  ;;  %2345 = vmatprep.subr.bf16.mxu1 %v2376_v11  ;;  %v2427_v57 = vld [vmem:[%s4643_s0 + $0xa4] ss:$8 sps:$4 sm:$0xff]   ;;  %v2465_v58 = vld [vmem:[%s4643_s0 + $0x190] ss:$8 sps:$4 sm:$0xff]   ;;  %v2429_v60 = vld [vmem:[%s4643_s0 + $0xa0] ss:$8 sps:$4 sm:$0xff]  }
  0x15   :  { %v2466_v59 = vld [vmem:[%s4643_s0 + $0x1a4] ss:$8 sps:$4 sm:$0xff]   ;;  %v2433_v61 = vld [vmem:[%s4643_s0 + $0xb4] ss:$8 sps:$4 sm:$0xff]   ;;  %v2468_v62 = vld [vmem:[%s4643_s0 + $0x1a0] ss:$8 sps:$4 sm:$0xff]  }
  0x16   :  { %v2469_v63 = vld [vmem:[%s4643_s0 + $0x1b4] ss:$8 sps:$4 sm:$0xff]   ;;  %v2435_v0 = vld [vmem:[%s4643_s0 + $0xb0] ss:$8 sps:$4 sm:$0xff]   ;;  %v2439_v1 = vld [vmem:[%s4643_s0 + $0xc4] ss:$8 sps:$4 sm:$0xff]  }
  0x17   :  { %596 = vmatpush1.bf16.msra.mxu0 %v2378_v12  ;;  %2354 = vmatpush1.bf16.msra.mxu1 %v2378_v12  ;;  %v2471_v2 = vld [vmem:[%s4643_s0 + $0x1b0] ss:$8 sps:$4 sm:$0xff]   ;;  %v2472_v3 = vld [vmem:[%s4643_s0 + $0x1c4] ss:$8 sps:$4 sm:$0xff]   ;;  %v2441_v4 = vld [vmem:[%s4643_s0 + $0xc0] ss:$8 sps:$4 sm:$0xff]  }
  0x18   :  { %597 = vmatprep.subr.bf16.mxu0 %v2379_v13  ;;  %2346 = vmatprep.subr.bf16.mxu1 %v2379_v13  ;;  %v2445_v5 = vld [vmem:[%s4643_s0 + $0xd4] ss:$8 sps:$4 sm:$0xff]   ;;  %v2474_v6 = vld [vmem:[%s4643_s0 + $0x1c0] ss:$8 sps:$4 sm:$0xff]   ;;  %v2447_v8 = vld [vmem:[%s4643_s0 + $0xd0] ss:$8 sps:$4 sm:$0xff]  }
  0x19   :  { %v2475_v7 = vld [vmem:[%s4643_s0 + $0x1d4] ss:$8 sps:$4 sm:$0xff]   ;;  %v2451_v9 = vld [vmem:[%s4643_s0 + $0xe4] ss:$8 sps:$4 sm:$0xff]   ;;  %v2477_v10 = vld [vmem:[%s4643_s0 + $0x1d0] ss:$8 sps:$4 sm:$0xff]  }
  0x1a   :  { %v2478_v11 = vld [vmem:[%s4643_s0 + $0x1e4] ss:$8 sps:$4 sm:$0xff]   ;;  %v2453_v12 = vld [vmem:[%s4643_s0 + $0xe0] ss:$8 sps:$4 sm:$0xff]   ;;  %v2457_v13 = vld [vmem:[%s4643_s0 + $0xf4] ss:$8 sps:$4 sm:$0xff]  }
  0x1b   :  { %598 = vmatpush1.bf16.msra.mxu0 %v2381_v14  ;;  %2355 = vmatpush1.bf16.msra.mxu1 %v2381_v14  ;;  %v2480_v14 = vld [vmem:[%s4643_s0 + $0x1e0] ss:$8 sps:$4 sm:$0xff]   ;;  %v2481_v15 = vld [vmem:[%s4643_s0 + $0x1f4] ss:$8 sps:$4 sm:$0xff]  }
  0x1c   :  { %599 = vmatprep.subr.bf16.mxu0 %v2382_v16  ;;  %2347 = vmatprep.subr.bf16.mxu1 %v2382_v16  ;;  %v2459_v16 = vld [vmem:[%s4643_s0 + $0xf0] ss:$8 sps:$4 sm:$0xff]  }
  0x1f   :  { %600 = vmatpush1.bf16.msra.mxu0 %v2384_v17  ;;  %2356 = vmatpush1.bf16.msra.mxu1 %v2384_v17  ;;  %v2483_v17 = vld [vmem:[%s4643_s0 + $0x1f0] ss:$8 sps:$4 sm:$0xff]  }
  0x20   :  { %601 = vmatprep.subr.bf16.mxu0 %v2385_v18  ;;  %2348 = vmatprep.subr.bf16.mxu1 %v2385_v18 }
  0x23   :  { %602 = vmatpush1.bf16.msra.mxu0 %v2387_v19  ;;  %2357 = vmatpush1.bf16.msra.mxu1 %v2387_v19 }
  0x26   :  { %618 = vmatmul.mubr.bf16.vlgmr.msra.gmra.mrb[0].mxu0 %v2388_v20  ;;  %778 = vmatmul.mubr.bf16.vlgmr.msra.gmra.mrb[0].mxu1 %v2412_v22 }
  0x27   :  { %2308 = vmatprep.mubr.msk.bf16.mxu0 %vm488_vm0, %v2391_v21  ;;  %2324 = vmatprep.mubr.msk.bf16.mxu1 %vm488_vm0, %v2418_v23 }
  0x2e   :  { %628 = vmatmul.mubr.bf16.gmra.mrb[4].mxu0 %v2393_v24  ;;  %788 = vmatmul.mubr.bf16.gmra.mrb[4].mxu1 %v2420_v26 }
  0x2f   :  { %2309 = vmatprep.mubr.msk.bf16.mxu0 %vm488_vm0, %v2394_v25  ;;  %2325 = vmatprep.mubr.msk.bf16.mxu1 %vm488_vm0, %v2424_v27 }
  0x36   :  { %638 = vmatmul.mubr.bf16.gmra.mrb[8].mxu0 %v2396_v28  ;;  %798 = vmatmul.mubr.bf16.gmra.mrb[8].mxu1 %v2426_v30 }
  0x37   :  { %2310 = vmatprep.mubr.msk.bf16.mxu0 %vm488_vm0, %v2397_v29  ;;  %2326 = vmatprep.mubr.msk.bf16.mxu1 %vm488_vm0, %v2430_v31 }
  0x3e   :  { %648 = vmatmul.mubr.bf16.gmra.mrb[12].mxu0 %v2399_v32  ;;  %808 = vmatmul.mubr.bf16.gmra.mrb[12].mxu1 %v2432_v34 }
  0x3f   :  { %2311 = vmatprep.mubr.msk.bf16.mxu0 %vm488_vm0, %v2400_v33  ;;  %2327 = vmatprep.mubr.msk.bf16.mxu1 %vm488_vm0, %v2436_v35 }
  0x46   :  { %658 = vmatmul.mubr.bf16.gmra.mrb[16].mxu0 %v2402_v36  ;;  %818 = vmatmul.mubr.bf16.gmra.mrb[16].mxu1 %v2438_v38 }
  0x47   :  { %2312 = vmatprep.mubr.msk.bf16.mxu0 %vm488_vm0, %v2403_v37  ;;  %2328 = vmatprep.mubr.msk.bf16.mxu1 %vm488_vm0, %v2442_v39 }
  0x4e   :  { %668 = vmatmul.mubr.bf16.gmra.mrb[20].mxu0 %v2405_v40  ;;  %828 = vmatmul.mubr.bf16.gmra.mrb[20].mxu1 %v2444_v42 }
  0x4f   :  { %2313 = vmatprep.mubr.msk.bf16.mxu0 %vm488_vm0, %v2406_v41  ;;  %2329 = vmatprep.mubr.msk.bf16.mxu1 %vm488_vm0, %v2448_v43 }
  0x56   :  { %678 = vmatmul.mubr.bf16.gmra.mrb[24].mxu0 %v2408_v44  ;;  %838 = vmatmul.mubr.bf16.gmra.mrb[24].mxu1 %v2450_v46 }
  0x57   :  { %2314 = vmatprep.mubr.msk.bf16.mxu0 %vm488_vm0, %v2409_v45  ;;  %2330 = vmatprep.mubr.msk.bf16.mxu1 %vm488_vm0, %v2454_v47 }
  0x5e   :  { %688 = vmatmul.mubr.bf16.gmra.mrb[28].mxu0 %v2411_v48  ;;  %848 = vmatmul.mubr.bf16.gmra.mrb[28].mxu1 %v2456_v50 }
  0x5f   :  { %2315 = vmatprep.mubr.msk.bf16.mxu0 %vm488_vm0, %v2415_v49  ;;  %2331 = vmatprep.mubr.msk.bf16.mxu1 %vm488_vm0, %v2460_v51 }
  0x66   :  { %698 = vmatmul.mubr.bf16.gmra.mrb[32].mxu0 %v2417_v52  ;;  %858 = vmatmul.mubr.bf16.gmra.mrb[32].mxu1 %v2462_v54 }
  0x67   :  { %2316 = vmatprep.mubr.msk.bf16.mxu0 %vm488_vm0, %v2421_v53  ;;  %2332 = vmatprep.mubr.msk.bf16.mxu1 %vm488_vm0, %v2463_v55 }
  0x6e   :  { %708 = vmatmul.mubr.bf16.gmra.mrb[36].mxu0 %v2423_v56  ;;  %868 = vmatmul.mubr.bf16.gmra.mrb[36].mxu1 %v2465_v58 }
  0x6f   :  { %2317 = vmatprep.mubr.msk.bf16.mxu0 %vm488_vm0, %v2427_v57  ;;  %2333 = vmatprep.mubr.msk.bf16.mxu1 %vm488_vm0, %v2466_v59 }
  0x76   :  { %718 = vmatmul.mubr.bf16.gmra.mrb[40].mxu0 %v2429_v60  ;;  %878 = vmatmul.mubr.bf16.gmra.mrb[40].mxu1 %v2468_v62 }
  0x77   :  { %2318 = vmatprep.mubr.msk.bf16.mxu0 %vm488_vm0, %v2433_v61  ;;  %2334 = vmatprep.mubr.msk.bf16.mxu1 %vm488_vm0, %v2469_v63 }
  0x7e   :  { %728 = vmatmul.mubr.bf16.gmra.mrb[44].mxu0 %v2435_v0  ;;  %888 = vmatmul.mubr.bf16.gmra.mrb[44].mxu1 %v2471_v2 }
  0x7f   :  { %2319 = vmatprep.mubr.msk.bf16.mxu0 %vm488_vm0, %v2439_v1  ;;  %2335 = vmatprep.mubr.msk.bf16.mxu1 %vm488_vm0, %v2472_v3 }
  0x86   :  { %738 = vmatmul.mubr.bf16.gmra.mrb[48].mxu0 %v2441_v4  ;;  %898 = vmatmul.mubr.bf16.gmra.mrb[48].mxu1 %v2474_v6 }
  0x87   :  { %2320 = vmatprep.mubr.msk.bf16.mxu0 %vm488_vm0, %v2445_v5  ;;  %2336 = vmatprep.mubr.msk.bf16.mxu1 %vm488_vm0, %v2475_v7 }
  0x8e   :  { %748 = vmatmul.mubr.bf16.gmra.mrb[52].mxu0 %v2447_v8  ;;  %908 = vmatmul.mubr.bf16.gmra.mrb[52].mxu1 %v2477_v10 }
  0x8f   :  { %2321 = vmatprep.mubr.msk.bf16.mxu0 %vm488_vm0, %v2451_v9  ;;  %2337 = vmatprep.mubr.msk.bf16.mxu1 %vm488_vm0, %v2478_v11 }
  0x96   :  { %758 = vmatmul.mubr.bf16.gmra.mrb[56].mxu0 %v2453_v12  ;;  %918 = vmatmul.mubr.bf16.gmra.mrb[56].mxu1 %v2480_v14 }
  0x97   :  { %2322 = vmatprep.mubr.msk.bf16.mxu0 %vm488_vm0, %v2457_v13  ;;  %2338 = vmatprep.mubr.msk.bf16.mxu1 %vm488_vm0, %v2481_v15 }
  0x9e   :  { %768 = vmatmul.mubr.bf16.gmra.mrb[60].mxu0 %v2459_v16  ;;  %928 = vmatmul.mubr.bf16.gmra.mrb[60].mxu1 %v2483_v17 }
  0xf9   :  { %v2816_v18 = vpop.f32.mrb[0].mxu0  ;;  %v2820_v20 = vpop.f32.mrb[0].mxu1 }
  0xfa   :  { %4761 = vst [vmem:[#allocation11_spill] sm:$0xff] %v2816_v18  ;;  %v2818_v19 = vpop.f32.mrb[1].mxu0  ;;  %v2824_v22 = vpop.f32.mrb[1].mxu1  ;;  %v1102_v23 = vmul.f32 %v2816_v18, %v2816_v18 }
  0xfb   :  { %4762 = vst [vmem:[#allocation12_spill] sm:$0xff] %v2818_v19  ;;  %v2822_v21 = vpop.f32.mrb[2].mxu0  ;;  %v2834_v27 = vpop.f32.mrb[2].mxu1  ;;  %v1103_v28 = vmul.f32 %v2818_v19, %v2818_v19 }
  0xfc   :  { %4763 = vst [vmem:[#allocation13_spill] sm:$0xff] %v2822_v21  ;;  %v939_v24 = vadd.f32 %v2822_v21, %v2816_v18  ;;  %v1104_v25 = vmul.f32 %v2822_v21, %v2822_v21  ;;  %v2832_v26 = vpop.f32.mrb[3].mxu0  ;;  %v2842_v31 = vpop.f32.mrb[3].mxu1 }
  0xfd   :  { %4764 = vst [vmem:[#allocation14_spill] sm:$0xff] %v2832_v26  ;;  %v1008_v29 = vadd.f32 %v2832_v26, %v2818_v19  ;;  %v1105_v30 = vmul.f32 %v2832_v26, %v2832_v26 }
  0xfe   :  { %v1230_v32 = vadd.f32 %v1104_v25, %v1102_v23 }
  0xff   :  { %v1299_v33 = vadd.f32 %v1105_v30, %v1103_v28 }
 0x101   :  { %v2844_v34 = vpop.f32.mrb[4].mxu0  ;;  %v2851_v38 = vpop.f32.mrb[4].mxu1 }
 0x102   :  { %4765 = vst [vmem:[#allocation15_spill] sm:$0xff] %v2844_v34  ;;  %v940_v35 = vadd.f32 %v939_v24, %v2844_v34  ;;  %v1106_v36 = vmul.f32 %v2844_v34, %v2844_v34  ;;  %v2849_v37 = vpop.f32.mrb[5].mxu0  ;;  %v2858_v42 = vpop.f32.mrb[5].mxu1 }
 0x103   :  { %4766 = vst [vmem:[#allocation16_spill] sm:$0xff] %v2849_v37  ;;  %v1009_v39 = vadd.f32 %v1008_v29, %v2849_v37  ;;  %v1107_v40 = vmul.f32 %v2849_v37, %v2849_v37  ;;  %v2856_v41 = vpop.f32.mrb[6].mxu0  ;;  %v2865_v47 = vpop.f32.mrb[6].mxu1 }
 0x104   :  { %4767 = vst [vmem:[#allocation17_spill] sm:$0xff] %v2856_v41  ;;  %v1231_v43 = vadd.f32 %v1230_v32, %v1106_v36  ;;  %v941_v44 = vadd.f32 %v940_v35, %v2856_v41  ;;  %v1108_v45 = vmul.f32 %v2856_v41, %v2856_v41  ;;  %v2863_v46 = vpop.f32.mrb[7].mxu0  ;;  %v2870_v51 = vpop.f32.mrb[7].mxu1 }
 0x105   :  { %4768 = vst [vmem:[#allocation18_spill] sm:$0xff] %v2863_v46  ;;  %v1300_v48 = vadd.f32 %v1299_v33, %v1107_v40  ;;  %v1010_v49 = vadd.f32 %v1009_v39, %v2863_v46  ;;  %v1109_v50 = vmul.f32 %v2863_v46, %v2863_v46 }
 0x106   :  { %v1232_v52 = vadd.f32 %v1231_v43, %v1108_v45 }
 0x107   :  { %v1301_v53 = vadd.f32 %v1300_v48, %v1109_v50 }
 0x109   :  { %v2872_v54 = vpop.f32.mrb[8].mxu0  ;;  %v2879_v58 = vpop.f32.mrb[8].mxu1 }
 0x10a   :  { %4769 = vst [vmem:[#allocation19_spill] sm:$0xff] %v2872_v54  ;;  %v942_v55 = vadd.f32 %v941_v44, %v2872_v54  ;;  %v1110_v56 = vmul.f32 %v2872_v54, %v2872_v54  ;;  %v2877_v57 = vpop.f32.mrb[9].mxu0  ;;  %v2886_v62 = vpop.f32.mrb[9].mxu1 }
 0x10b   :  { %4770 = vst [vmem:[#allocation20_spill] sm:$0xff] %v2877_v57  ;;  %v1011_v59 = vadd.f32 %v1010_v49, %v2877_v57  ;;  %v1111_v60 = vmul.f32 %v2877_v57, %v2877_v57  ;;  %v2884_v61 = vpop.f32.mrb[10].mxu0  ;;  %v2893_v3 = vpop.f32.mrb[10].mxu1 }
 0x10c   :  { %4771 = vst [vmem:[#allocation21_spill] sm:$0xff] %v2884_v61  ;;  %v1233_v63 = vadd.f32 %v1232_v52, %v1110_v56  ;;  %v943_v0 = vadd.f32 %v942_v55, %v2884_v61  ;;  %v1112_v1 = vmul.f32 %v2884_v61, %v2884_v61  ;;  %v2891_v2 = vpop.f32.mrb[11].mxu0  ;;  %v2898_v7 = vpop.f32.mrb[11].mxu1 }
 0x10d   :  { %4772 = vst [vmem:[#allocation22_spill] sm:$0xff] %v2891_v2  ;;  %v1302_v4 = vadd.f32 %v1301_v53, %v1111_v60  ;;  %v1012_v5 = vadd.f32 %v1011_v59, %v2891_v2  ;;  %v1113_v6 = vmul.f32 %v2891_v2, %v2891_v2 }
 0x10e   :  { %v1234_v8 = vadd.f32 %v1233_v63, %v1112_v1 }
 0x10f   :  { %v1303_v9 = vadd.f32 %v1302_v4, %v1113_v6 }
 0x111   :  { %v2900_v10 = vpop.f32.mrb[12].mxu0  ;;  %v2907_v14 = vpop.f32.mrb[12].mxu1 }
 0x112   :  { %4773 = vst [vmem:[#allocation23_spill] sm:$0xff] %v2900_v10  ;;  %v944_v11 = vadd.f32 %v943_v0, %v2900_v10  ;;  %v1114_v12 = vmul.f32 %v2900_v10, %v2900_v10  ;;  %v2905_v13 = vpop.f32.mrb[13].mxu0  ;;  %v2914_v23 = vpop.f32.mrb[13].mxu1  ;;  %v4670_v10 = vlaneseq }
 0x113   :  { %4774 = vst [vmem:[#allocation24_spill] sm:$0xff] %v2905_v13  ;;  %v1013_v15 = vadd.f32 %v1012_v5, %v2905_v13  ;;  %v1115_v16 = vmul.f32 %v2905_v13, %v2905_v13  ;;  %v2912_v17 = vpop.f32.mrb[14].mxu0  ;;  %v2921_v30 = vpop.f32.mrb[14].mxu1 }
 0x114   :  { %4775 = vst [vmem:[#allocation25_spill] sm:$0xff] %v2912_v17  ;;  %v1235_v24 = vadd.f32 %v1234_v8, %v1114_v12  ;;  %v945_v25 = vadd.f32 %v944_v11, %v2912_v17  ;;  %v1116_v28 = vmul.f32 %v2912_v17, %v2912_v17  ;;  %v2919_v29 = vpop.f32.mrb[15].mxu0  ;;  %v2926_v36 = vpop.f32.mrb[15].mxu1  ;;  %vm3069_vm1 = vcmp.lt.s32.totalorder %v4670_v10, 256 }
 0x115   :  { %4776 = vst [vmem:[#allocation26_spill] sm:$0xff] %v2919_v29  ;;  %v1304_v32 = vadd.f32 %v1303_v9, %v1115_v16  ;;  %v1014_v33 = vadd.f32 %v1013_v15, %v2919_v29  ;;  %v1117_v35 = vmul.f32 %v2919_v29, %v2919_v29 }
 0x116   :  { %v1236_v39 = vadd.f32 %v1235_v24, %v1116_v28 }
 0x117   :  { %v1305_v40 = vadd.f32 %v1304_v32, %v1117_v35 }
 0x119   :  { %v2928_v43 = vpop.f32.mrb[16].mxu0  ;;  %v2935_v49 = vpop.f32.mrb[16].mxu1 }
 0x11a   :  { %4777 = vst [vmem:[#allocation27_spill] sm:$0xff] %v2928_v43  ;;  %v946_v44 = vadd.f32 %v945_v25, %v2928_v43  ;;  %v1118_v45 = vmul.f32 %v2928_v43, %v2928_v43  ;;  %v2933_v48 = vpop.f32.mrb[17].mxu0  ;;  %v2942_v55 = vpop.f32.mrb[17].mxu1 }
 0x11b   :  { %4778 = vst [vmem:[#allocation28_spill] sm:$0xff] %v2933_v48  ;;  %v1015_v50 = vadd.f32 %v1014_v33, %v2933_v48  ;;  %v1119_v52 = vmul.f32 %v2933_v48, %v2933_v48  ;;  %v2940_v53 = vpop.f32.mrb[18].mxu0  ;;  %v2949_v0 = vpop.f32.mrb[18].mxu1 }
 0x11c   :  { %4779 = vst [vmem:[#allocation29_spill] sm:$0xff] %v2940_v53  ;;  %v1237_v56 = vadd.f32 %v1236_v39, %v1118_v45  ;;  %v947_v59 = vadd.f32 %v946_v44, %v2940_v53  ;;  %v1120_v60 = vmul.f32 %v2940_v53, %v2940_v53  ;;  %v2947_v63 = vpop.f32.mrb[19].mxu0  ;;  %v2954_v6 = vpop.f32.mrb[19].mxu1 }
 0x11d   :  { %4780 = vst [vmem:[#allocation30_spill] sm:$0xff] %v2947_v63  ;;  %v1306_v1 = vadd.f32 %v1305_v40, %v1119_v52  ;;  %v1016_v4 = vadd.f32 %v1015_v50, %v2947_v63  ;;  %v1121_v5 = vmul.f32 %v2947_v63, %v2947_v63 }
 0x11e   :  { %v1238_v8 = vadd.f32 %v1237_v56, %v1120_v60 }
 0x11f   :  { %v1307_v9 = vadd.f32 %v1306_v1, %v1121_v5 }
 0x121   :  { %v2956_v11 = vpop.f32.mrb[20].mxu0  ;;  %v2963_v24 = vpop.f32.mrb[20].mxu1 }
 0x122   :  { %4781 = vst [vmem:[#allocation31_spill] sm:$0xff] %v2956_v11  ;;  %v948_v12 = vadd.f32 %v947_v59, %v2956_v11  ;;  %v1122_v15 = vmul.f32 %v2956_v11, %v2956_v11  ;;  %v2961_v16 = vpop.f32.mrb[21].mxu0  ;;  %v2970_v33 = vpop.f32.mrb[21].mxu1 }
 0x123   :  { %4782 = vst [vmem:[#allocation32_spill] sm:$0xff] %v2961_v16  ;;  %v1017_v25 = vadd.f32 %v1016_v4, %v2961_v16  ;;  %v1123_v28 = vmul.f32 %v2961_v16, %v2961_v16  ;;  %v2968_v32 = vpop.f32.mrb[22].mxu0  ;;  %v2977_v45 = vpop.f32.mrb[22].mxu1 }
 0x124   :  { %4783 = vst [vmem:[#allocation33_spill] sm:$0xff] %v2968_v32  ;;  %v1239_v35 = vadd.f32 %v1238_v8, %v1122_v15  ;;  %v949_v39 = vadd.f32 %v948_v12, %v2968_v32  ;;  %v1124_v40 = vmul.f32 %v2968_v32, %v2968_v32  ;;  %v2975_v44 = vpop.f32.mrb[23].mxu0  ;;  %v2982_v59 = vpop.f32.mrb[23].mxu1 }
 0x125   :  { %4784 = vst [vmem:[#allocation34_spill] sm:$0xff] %v2975_v44  ;;  %v1308_v50 = vadd.f32 %v1307_v9, %v1123_v28  ;;  %v1018_v52 = vadd.f32 %v1017_v25, %v2975_v44  ;;  %v1125_v56 = vmul.f32 %v2975_v44, %v2975_v44 }
 0x126   :  { %v1240_v60 = vadd.f32 %v1239_v35, %v1124_v40 }
 0x127   :  { %v1309_v1 = vadd.f32 %v1308_v50, %v1125_v56 }
 0x129   :  { %v2984_v4 = vpop.f32.mrb[24].mxu0  ;;  %v2991_v15 = vpop.f32.mrb[24].mxu1 }
 0x12a   :  { %4785 = vst [vmem:[#allocation35_spill] sm:$0xff] %v2984_v4  ;;  %v950_v5 = vadd.f32 %v949_v39, %v2984_v4  ;;  %v1126_v8 = vmul.f32 %v2984_v4, %v2984_v4  ;;  %v2989_v12 = vpop.f32.mrb[25].mxu0  ;;  %v2998_v35 = vpop.f32.mrb[25].mxu1 }
 0x12b   :  { %4786 = vst [vmem:[#allocation36_spill] sm:$0xff] %v2989_v12  ;;  %v1019_v9 = vadd.f32 %v1018_v52, %v2989_v12  ;;  %v1127_v25 = vmul.f32 %v2989_v12, %v2989_v12  ;;  %v2996_v28 = vpop.f32.mrb[26].mxu0  ;;  %v3005_v4 = vpop.f32.mrb[26].mxu1 }
 0x12c   :  { %4787 = vst [vmem:[#allocation37_spill] sm:$0xff] %v2996_v28  ;;  %v1241_v40 = vadd.f32 %v1240_v60, %v1126_v8  ;;  %v951_v50 = vadd.f32 %v950_v5, %v2996_v28  ;;  %v1128_v39 = vmul.f32 %v2996_v28, %v2996_v28  ;;  %v3003_v56 = vpop.f32.mrb[27].mxu0  ;;  %v3010_v32 = vpop.f32.mrb[27].mxu1 }
 0x12d   :  { %4788 = vst [vmem:[#allocation38_spill] sm:$0xff] %v3003_v56  ;;  %v1310_v44 = vadd.f32 %v1309_v1, %v1127_v25  ;;  %v1020_v52 = vadd.f32 %v1019_v9, %v3003_v56  ;;  %v1129_v12 = vmul.f32 %v3003_v56, %v3003_v56 }
 0x12e   :  { %v1242_v16 = vadd.f32 %v1241_v40, %v1128_v39 }
 0x12f   :  { %v1311_v11 = vadd.f32 %v1310_v44, %v1129_v12 }
 0x131   :  { %v3012_v60 = vpop.f32.mrb[28].mxu0  ;;  %v3019_v63 = vpop.f32.mrb[28].mxu1 }
 0x132   :  { %4789 = vst [vmem:[#allocation39_spill] sm:$0xff] %v3012_v60  ;;  %v952_v5 = vadd.f32 %v951_v50, %v3012_v60  ;;  %v1130_v8 = vmul.f32 %v3012_v60, %v3012_v60  ;;  %v3017_v28 = vpop.f32.mrb[29].mxu0  ;;  %v3026_v40 = vpop.f32.mrb[29].mxu1 }
 0x133   :  { %4790 = vst [vmem:[#allocation40_spill] sm:$0xff] %v3017_v28  ;;  %v1021_v1 = vadd.f32 %v1020_v52, %v3017_v28  ;;  %v1131_v9 = vmul.f32 %v3017_v28, %v3017_v28  ;;  %v3024_v25 = vpop.f32.mrb[30].mxu0  ;;  %v3033_v60 = vpop.f32.mrb[30].mxu1 }
 0x134   :  { %4791 = vst [vmem:[#allocation41_spill] sm:$0xff] %v3024_v25  ;;  %v1243_v44 = vadd.f32 %v1242_v16, %v1130_v8  ;;  %v953_v12 = vadd.f32 %v952_v5, %v3024_v25  ;;  %v1132_v50 = vmul.f32 %v3024_v25, %v3024_v25  ;;  %v3031_v39 = vpop.f32.mrb[31].mxu0  ;;  %v3038_v53 = vpop.f32.mrb[31].mxu1 }
 0x135   :  { %4792 = vst [vmem:[#allocation42_spill] sm:$0xff] %v3031_v39  ;;  %v1312_v56 = vadd.f32 %v1311_v11, %v1131_v9  ;;  %v1022_v52 = vadd.f32 %v1021_v1, %v3031_v39  ;;  %v1133_v28 = vmul.f32 %v3031_v39, %v3031_v39 }
 0x136   :  { %v1244_v48 = vadd.f32 %v1243_v44, %v1132_v50 }
 0x137   :  { %v1313_v43 = vadd.f32 %v1312_v56, %v1133_v28 }
 0x139   :  { %v3040_v16 = vpop.f32.mrb[32].mxu0  ;;  %v3047_v29 = vpop.f32.mrb[32].mxu1 }
 0x13a   :  { %4793 = vst [vmem:[#allocation43_spill] sm:$0xff] %v3040_v16  ;;  %v954_v5 = vadd.f32 %v953_v12, %v3040_v16  ;;  %v1134_v8 = vmul.f32 %v3040_v16, %v3040_v16  ;;  %v3045_v25 = vpop.f32.mrb[33].mxu0  ;;  %v3054_v44 = vpop.f32.mrb[33].mxu1 }
 0x13b   :  { %4794 = vst [vmem:[#allocation44_spill] sm:$0xff] %v3045_v25  ;;  %v1023_v11 = vadd.f32 %v1022_v52, %v3045_v25  ;;  %v1135_v1 = vmul.f32 %v3045_v25, %v3045_v25  ;;  %v3052_v9 = vpop.f32.mrb[34].mxu0  ;;  %v3061_v16 = vpop.f32.mrb[34].mxu1 }
 0x13c   :  { %4795 = vst [vmem:[#allocation45_spill] sm:$0xff] %v3052_v9  ;;  %v1245_v28 = vadd.f32 %v1244_v48, %v1134_v8  ;;  %v955_v56 = vadd.f32 %v954_v5, %v3052_v9  ;;  %v1136_v12 = vmul.f32 %v3052_v9, %v3052_v9  ;;  %v3059_v50 = vpop.f32.mrb[35].mxu0  ;;  %4797 = vst [vmem:[#allocation47_spill] sm:$0xff] %v3061_v16  ;;  %v3066_v17 = vpop.f32.mrb[35].mxu1  ;;  %v4799_v5 = vmov 0 }
 0x13d   :  { %4796 = vst [vmem:[#allocation46_spill] sm:$0xff] %v3059_v50  ;;  %v1314_v39 = vadd.f32 %v1313_v43, %v1135_v1  ;;  %v1024_v52 = vadd.f32 %v1023_v11, %v3059_v50  ;;  %v1137_v25 = vmul.f32 %v3059_v50, %v3059_v50  ;;  %4798 = vst [vmem:[#allocation48_spill] sm:$0xff] %v3066_v17  ;;  %v4800_v5 = vsel %vm3069_vm1, 4294967295, %v4799_v5 }
 0x13e   :  { %v1246_v13 = vadd.f32 %v1245_v28, %v1136_v12  ;;  %4801 = vst [vmem:[#allocation49_spill] sm:$0xff] %v4800_v5  ;;  %v2510_v9 = vmov 0.0  }
 0x13f   :  { %v1315_v48 = vadd.f32 %v1314_v39, %v1137_v25  ;;  %26 = vst.msk [vmem:[#allocation3] sm:$0x3] %vm3069_vm1, %v2510_v9  ;;  %27 = vst.msk [vmem:[#allocation4] sm:$0x3] %vm3069_vm1, %v2510_v9 }
 0x141   :  { %v3073_v8 = vpop.f32.mrb[36].mxu0  ;;  %v3084_v39 = vpop.f32.mrb[36].mxu1 }
 0x142   :  { %4802 = vst [vmem:[#allocation50_spill] sm:$0xff] %v3073_v8  ;;  %v956_v43 = vadd.f32 %v955_v56, %v3073_v8  ;;  %v1138_v11 = vmul.f32 %v3073_v8, %v3073_v8  ;;  %v3082_v25 = vpop.f32.mrb[37].mxu0  ;;  %4804 = vst [vmem:[#allocation52_spill] sm:$0xff] %v3084_v39  ;;  %v3091_v10 = vpop.f32.mrb[37].mxu1 }
 0x143   :  { %4803 = vst [vmem:[#allocation51_spill] sm:$0xff] %v3082_v25  ;;  %v1025_v1 = vadd.f32 %v1024_v52, %v3082_v25  ;;  %v1139_v28 = vmul.f32 %v3082_v25, %v3082_v25  ;;  %v3089_v12 = vpop.f32.mrb[38].mxu0  ;;  %4806 = vst [vmem:[#allocation54_spill] sm:$0xff] %v3091_v10  ;;  %v3098_v2 = vpop.f32.mrb[38].mxu1 }
 0x144   :  { %4805 = vst [vmem:[#allocation53_spill] sm:$0xff] %v3089_v12  ;;  %v1247_v50 = vadd.f32 %v1246_v13, %v1138_v11  ;;  %v957_v9 = vadd.f32 %v956_v43, %v3089_v12  ;;  %v1140_v56 = vmul.f32 %v3089_v12, %v3089_v12  ;;  %v3096_v8 = vpop.f32.mrb[39].mxu0  ;;  %4808 = vst [vmem:[#allocation56_spill] sm:$0xff] %v3098_v2  ;;  %v3103_v57 = vpop.f32.mrb[39].mxu1 }
 0x145   :  { %4807 = vst [vmem:[#allocation55_spill] sm:$0xff] %v3096_v8  ;;  %v1316_v61 = vadd.f32 %v1315_v48, %v1139_v28  ;;  %v1026_v52 = vadd.f32 %v1025_v1, %v3096_v8  ;;  %v1141_v25 = vmul.f32 %v3096_v8, %v3096_v8  ;;  %4809 = vst [vmem:[#allocation57_spill] sm:$0xff] %v3103_v57 }
 0x146   :  { %v1248_v54 = vadd.f32 %v1247_v50, %v1140_v56 }
 0x147   :  { %v1317_v46 = vadd.f32 %v1316_v61, %v1141_v25 }
 0x149   :  { %v3105_v13 = vpop.f32.mrb[40].mxu0  ;;  %v3112_v41 = vpop.f32.mrb[40].mxu1 }
 0x14a   :  { %4810 = vst [vmem:[#allocation58_spill] sm:$0xff] %v3105_v13  ;;  %v958_v43 = vadd.f32 %v957_v9, %v3105_v13  ;;  %v1142_v11 = vmul.f32 %v3105_v13, %v3105_v13  ;;  %v3110_v12 = vpop.f32.mrb[41].mxu0  ;;  %4812 = vst [vmem:[#allocation60_spill] sm:$0xff] %v3112_v41  ;;  %v3119_v50 = vpop.f32.mrb[41].mxu1 }
 0x14b   :  { %4811 = vst [vmem:[#allocation59_spill] sm:$0xff] %v3110_v12  ;;  %v1027_v48 = vadd.f32 %v1026_v52, %v3110_v12  ;;  %v1143_v1 = vmul.f32 %v3110_v12, %v3110_v12  ;;  %v3117_v28 = vpop.f32.mrb[42].mxu0  ;;  %4814 = vst [vmem:[#allocation62_spill] sm:$0xff] %v3119_v50  ;;  %v3126_v13 = vpop.f32.mrb[42].mxu1 }
 0x14c   :  { %4813 = vst [vmem:[#allocation61_spill] sm:$0xff] %v3117_v28  ;;  %v1249_v61 = vadd.f32 %v1248_v54, %v1142_v11  ;;  %v959_v25 = vadd.f32 %v958_v43, %v3117_v28  ;;  %v1144_v9 = vmul.f32 %v3117_v28, %v3117_v28  ;;  %v3124_v56 = vpop.f32.mrb[43].mxu0  ;;  %4816 = vst [vmem:[#allocation64_spill] sm:$0xff] %v3126_v13  ;;  %v3131_v37 = vpop.f32.mrb[43].mxu1 }
 0x14d   :  { %4815 = vst [vmem:[#allocation63_spill] sm:$0xff] %v3124_v56  ;;  %v1318_v8 = vadd.f32 %v1317_v46, %v1143_v1  ;;  %v1028_v52 = vadd.f32 %v1027_v48, %v3124_v56  ;;  %v1145_v12 = vmul.f32 %v3124_v56, %v3124_v56  ;;  %4817 = vst [vmem:[#allocation65_spill] sm:$0xff] %v3131_v37 }
 0x14e   :  { %v1250_v34 = vadd.f32 %v1249_v61, %v1144_v9 }
 0x14f   :  { %v1319_v26 = vadd.f32 %v1318_v8, %v1145_v12 }
 0x151   :  { %v3133_v54 = vpop.f32.mrb[44].mxu0  ;;  %v3140_v21 = vpop.f32.mrb[44].mxu1 }
 0x152   :  { %4818 = vst [vmem:[#allocation66_spill] sm:$0xff] %v3133_v54  ;;  %v960_v43 = vadd.f32 %v959_v25, %v3133_v54  ;;  %v1146_v11 = vmul.f32 %v3133_v54, %v3133_v54  ;;  %v3138_v28 = vpop.f32.mrb[45].mxu0  ;;  %4820 = vst [vmem:[#allocation68_spill] sm:$0xff] %v3140_v21  ;;  %v3147_v61 = vpop.f32.mrb[45].mxu1 }
 0x153   :  { %4819 = vst [vmem:[#allocation67_spill] sm:$0xff] %v3138_v28  ;;  %v1029_v46 = vadd.f32 %v1028_v52, %v3138_v28  ;;  %v1147_v48 = vmul.f32 %v3138_v28, %v3138_v28  ;;  %v3145_v1 = vpop.f32.mrb[46].mxu0  ;;  %4822 = vst [vmem:[#allocation70_spill] sm:$0xff] %v3147_v61  ;;  %v3154_v54 = vpop.f32.mrb[46].mxu1 }
 0x154   :  { %4821 = vst [vmem:[#allocation69_spill] sm:$0xff] %v3145_v1  ;;  %v1251_v8 = vadd.f32 %v1250_v34, %v1146_v11  ;;  %v961_v12 = vadd.f32 %v960_v43, %v3145_v1  ;;  %v1148_v25 = vmul.f32 %v3145_v1, %v3145_v1  ;;  %v3152_v9 = vpop.f32.mrb[47].mxu0  ;;  %4824 = vst [vmem:[#allocation72_spill] sm:$0xff] %v3154_v54  ;;  %v3159_v19 = vpop.f32.mrb[47].mxu1 }
 0x155   :  { %4823 = vst [vmem:[#allocation71_spill] sm:$0xff] %v3152_v9  ;;  %v1320_v56 = vadd.f32 %v1319_v26, %v1147_v48  ;;  %v1030_v52 = vadd.f32 %v1029_v46, %v3152_v9  ;;  %v1149_v28 = vmul.f32 %v3152_v9, %v3152_v9  ;;  %4825 = vst [vmem:[#allocation73_spill] sm:$0xff] %v3159_v19 }
 0x156   :  { %v1252_v18 = vadd.f32 %v1251_v8, %v1148_v25 }
 0x157   :  { %v1321_v5 = vadd.f32 %v1320_v56, %v1149_v28 }
 0x159   :  { %v3161_v34 = vpop.f32.mrb[48].mxu0  ;;  %v3168_v54 = vpop.f32.mrb[48].mxu1 }
 0x15a   :  { %4826 = vst [vmem:[#allocation74_spill] sm:$0xff] %v3161_v34  ;;  %v962_v43 = vadd.f32 %v961_v12, %v3161_v34  ;;  %v1150_v11 = vmul.f32 %v3161_v34, %v3161_v34  ;;  %v3166_v1 = vpop.f32.mrb[49].mxu0  ;;  %4828 = vst [vmem:[#allocation76_spill] sm:$0xff] %v3168_v54  ;;  %v3175_v8 = vpop.f32.mrb[49].mxu1 }
 0x15b   :  { %4827 = vst [vmem:[#allocation75_spill] sm:$0xff] %v3166_v1  ;;  %v1031_v26 = vadd.f32 %v1030_v52, %v3166_v1  ;;  %v1151_v46 = vmul.f32 %v3166_v1, %v3166_v1  ;;  %v3173_v48 = vpop.f32.mrb[50].mxu0  ;;  %4830 = vst [vmem:[#allocation78_spill] sm:$0xff] %v3175_v8  ;;  %v3182_v34 = vpop.f32.mrb[50].mxu1 }
 0x15c   :  { %4829 = vst [vmem:[#allocation77_spill] sm:$0xff] %v3173_v48  ;;  %v1253_v28 = vadd.f32 %v1252_v18, %v1150_v11  ;;  %v963_v56 = vadd.f32 %v962_v43, %v3173_v48  ;;  %v1152_v12 = vmul.f32 %v3173_v48, %v3173_v48  ;;  %v3180_v25 = vpop.f32.mrb[51].mxu0  ;;  %4832 = vst [vmem:[#allocation80_spill] sm:$0xff] %v3182_v34  ;;  %v3187_v54 = vpop.f32.mrb[51].mxu1 }
 0x15d   :  { %4831 = vst [vmem:[#allocation79_spill] sm:$0xff] %v3180_v25  ;;  %v1322_v9 = vadd.f32 %v1321_v5, %v1151_v46  ;;  %v1032_v52 = vadd.f32 %v1031_v26, %v3180_v25  ;;  %v1153_v1 = vmul.f32 %v3180_v25, %v3180_v25  ;;  %4833 = vst [vmem:[#allocation81_spill] sm:$0xff] %v3187_v54 }
 0x15e   :  { %v1254_v19 = vadd.f32 %v1253_v28, %v1152_v12 }
 0x15f   :  { %v1323_v8 = vadd.f32 %v1322_v9, %v1153_v1 }
 0x161   :  { %v3189_v18 = vpop.f32.mrb[52].mxu0  ;;  %v3196_v34 = vpop.f32.mrb[52].mxu1 }
 0x162   :  { %4834 = vst [vmem:[#allocation82_spill] sm:$0xff] %v3189_v18  ;;  %v964_v43 = vadd.f32 %v963_v56, %v3189_v18  ;;  %v1154_v11 = vmul.f32 %v3189_v18, %v3189_v18  ;;  %v3194_v48 = vpop.f32.mrb[53].mxu0  ;;  %4836 = vst [vmem:[#allocation84_spill] sm:$0xff] %v3196_v34  ;;  %v3203_v28 = vpop.f32.mrb[53].mxu1 }
 0x163   :  { %4835 = vst [vmem:[#allocation83_spill] sm:$0xff] %v3194_v48  ;;  %v1033_v5 = vadd.f32 %v1032_v52, %v3194_v48  ;;  %v1155_v26 = vmul.f32 %v3194_v48, %v3194_v48  ;;  %v3201_v46 = vpop.f32.mrb[54].mxu0  ;;  %4838 = vst [vmem:[#allocation86_spill] sm:$0xff] %v3203_v28  ;;  %v3210_v18 = vpop.f32.mrb[54].mxu1 }
 0x164   :  { %4837 = vst [vmem:[#allocation85_spill] sm:$0xff] %v3201_v46  ;;  %v1255_v1 = vadd.f32 %v1254_v19, %v1154_v11  ;;  %v965_v9 = vadd.f32 %v964_v43, %v3201_v46  ;;  %v1156_v56 = vmul.f32 %v3201_v46, %v3201_v46  ;;  %v3208_v12 = vpop.f32.mrb[55].mxu0  ;;  %4840 = vst [vmem:[#allocation88_spill] sm:$0xff] %v3210_v18  ;;  %v3215_v34 = vpop.f32.mrb[55].mxu1 }
 0x165   :  { %4839 = vst [vmem:[#allocation87_spill] sm:$0xff] %v3208_v12  ;;  %v1324_v25 = vadd.f32 %v1323_v8, %v1155_v26  ;;  %v1034_v52 = vadd.f32 %v1033_v5, %v3208_v12  ;;  %v1157_v48 = vmul.f32 %v3208_v12, %v3208_v12  ;;  %4841 = vst [vmem:[#allocation89_spill] sm:$0xff] %v3215_v34 }
 0x166   :  { %v1256_v54 = vadd.f32 %v1255_v1, %v1156_v56 }
 0x167   :  { %v1325_v28 = vadd.f32 %v1324_v25, %v1157_v48 }
 0x169   :  { %v3217_v19 = vpop.f32.mrb[56].mxu0  ;;  %v3224_v18 = vpop.f32.mrb[56].mxu1 }
 0x16a   :  { %4842 = vst [vmem:[#allocation90_spill] sm:$0xff] %v3217_v19  ;;  %v966_v43 = vadd.f32 %v965_v9, %v3217_v19  ;;  %v1158_v11 = vmul.f32 %v3217_v19, %v3217_v19  ;;  %v3222_v46 = vpop.f32.mrb[57].mxu0  ;;  %4844 = vst [vmem:[#allocation92_spill] sm:$0xff] %v3224_v18  ;;  %v3231_v1 = vpop.f32.mrb[57].mxu1 }
 0x16b   :  { %4843 = vst [vmem:[#allocation91_spill] sm:$0xff] %v3222_v46  ;;  %v1035_v8 = vadd.f32 %v1034_v52, %v3222_v46  ;;  %v1159_v5 = vmul.f32 %v3222_v46, %v3222_v46  ;;  %v3229_v26 = vpop.f32.mrb[58].mxu0  ;;  %4846 = vst [vmem:[#allocation94_spill] sm:$0xff] %v3231_v1  ;;  %v3238_v19 = vpop.f32.mrb[58].mxu1 }
 0x16c   :  { %4845 = vst [vmem:[#allocation93_spill] sm:$0xff] %v3229_v26  ;;  %v1257_v48 = vadd.f32 %v1256_v54, %v1158_v11  ;;  %v967_v25 = vadd.f32 %v966_v43, %v3229_v26  ;;  %v1160_v9 = vmul.f32 %v3229_v26, %v3229_v26  ;;  %v3236_v56 = vpop.f32.mrb[59].mxu0  ;;  %4848 = vst [vmem:[#allocation96_spill] sm:$0xff] %v3238_v19  ;;  %v3243_v18 = vpop.f32.mrb[59].mxu1 }
 0x16d   :  { %4847 = vst [vmem:[#allocation95_spill] sm:$0xff] %v3236_v56  ;;  %v1326_v12 = vadd.f32 %v1325_v28, %v1159_v5  ;;  %v1036_v52 = vadd.f32 %v1035_v8, %v3236_v56  ;;  %v1161_v46 = vmul.f32 %v3236_v56, %v3236_v56  ;;  %4849 = vst [vmem:[#allocation97_spill] sm:$0xff] %v3243_v18 }
 0x16e   :  { %v1258_v34 = vadd.f32 %v1257_v48, %v1160_v9 }
 0x16f   :  { %v1327_v1 = vadd.f32 %v1326_v12, %v1161_v46 }
 0x171   :  { %v3245_v54 = vpop.f32.mrb[60].mxu0  ;;  %v3252_v19 = vpop.f32.mrb[60].mxu1 }
 0x172   :  { %4850 = vst [vmem:[#allocation98_spill] sm:$0xff] %v3245_v54  ;;  %v968_v43 = vadd.f32 %v967_v25, %v3245_v54  ;;  %v1162_v11 = vmul.f32 %v3245_v54, %v3245_v54  ;;  %v3250_v26 = vpop.f32.mrb[61].mxu0  ;;  %4852 = vst [vmem:[#allocation100_spill] sm:$0xff] %v3252_v19  ;;  %v3259_v48 = vpop.f32.mrb[61].mxu1 }
 0x173   :  { %4851 = vst [vmem:[#allocation99_spill] sm:$0xff] %v3250_v26  ;;  %v1037_v28 = vadd.f32 %v1036_v52, %v3250_v26  ;;  %v1163_v8 = vmul.f32 %v3250_v26, %v3250_v26  ;;  %v3257_v5 = vpop.f32.mrb[62].mxu0  ;;  %4854 = vst [vmem:[#allocation102_spill] sm:$0xff] %v3259_v48  ;;  %v3266_v54 = vpop.f32.mrb[62].mxu1 }
 0x174   :  { %4853 = vst [vmem:[#allocation101_spill] sm:$0xff] %v3257_v5  ;;  %v1259_v46 = vadd.f32 %v1258_v34, %v1162_v11  ;;  %v969_v12 = vadd.f32 %v968_v43, %v3257_v5  ;;  %v1164_v25 = vmul.f32 %v3257_v5, %v3257_v5  ;;  %v3264_v9 = vpop.f32.mrb[63].mxu0  ;;  %4856 = vst [vmem:[#allocation104_spill] sm:$0xff] %v3266_v54  ;;  %v3271_v18 = vpop.f32.mrb[63].mxu1 }
 0x175   :  { %4855 = vst [vmem:[#allocation103_spill] sm:$0xff] %v3264_v9  ;;  %v1328_v56 = vadd.f32 %v1327_v1, %v1163_v8  ;;  %v1038_v52 = vadd.f32 %v1037_v28, %v3264_v9  ;;  %v1165_v26 = vmul.f32 %v3264_v9, %v3264_v9  ;;  %4857 = vst [vmem:[#allocation105_spill] sm:$0xff] %v3271_v18 }
 0x176   :  { %v1166_v34 = vmul.f32 %v2820_v20, %v2820_v20  ;;  %v970_v43 = vadd.f32 %v969_v12, %v2820_v20  ;;  %v1260_v11 = vadd.f32 %v1259_v46, %v1164_v25  ;;  %v1167_v5 = vmul.f32 %v2824_v22, %v2824_v22 }
 0x177   :  { %v1039_v48 = vadd.f32 %v1038_v52, %v2824_v22  ;;  %v1329_v54 = vadd.f32 %v1328_v56, %v1165_v26  ;;  %v1168_v1 = vmul.f32 %v2834_v27, %v2834_v27  ;;  %v1169_v9 = vmul.f32 %v2842_v31, %v2842_v31 }
 0x178   :  { %v971_v28 = vadd.f32 %v970_v43, %v2834_v27  ;;  %v1261_v8 = vadd.f32 %v1260_v11, %v1166_v34  ;;  %v1170_v46 = vmul.f32 %v2851_v38, %v2851_v38  ;;  %v1171_v26 = vmul.f32 %v2858_v42, %v2858_v42 }
 0x179   :  { %v1040_v18 = vadd.f32 %v1039_v48, %v2842_v31  ;;  %v1330_v19 = vadd.f32 %v1329_v54, %v1167_v5  ;;  %v1172_v34 = vmul.f32 %v2865_v47, %v2865_v47  ;;  %v1173_v54 = vmul.f32 %v2870_v51, %v2870_v51 }
 0x17a   :  { %v972_v12 = vadd.f32 %v971_v28, %v2851_v38  ;;  %v1262_v25 = vadd.f32 %v1261_v8, %v1168_v1  ;;  %v1174_v1 = vmul.f32 %v2879_v58, %v2879_v58 }
 0x17b   :  { %v1041_v56 = vadd.f32 %v1040_v18, %v2858_v42  ;;  %v1331_v52 = vadd.f32 %v1330_v19, %v1169_v9  ;;  %v1175_v18 = vmul.f32 %v2886_v62, %v2886_v62 }
 0x17c   :  { %v973_v43 = vadd.f32 %v972_v12, %v2865_v47  ;;  %v1263_v11 = vadd.f32 %v1262_v25, %v1170_v46  ;;  %v1176_v46 = vmul.f32 %v2893_v3, %v2893_v3 }
 0x17d   :  { %v1042_v5 = vadd.f32 %v1041_v56, %v2870_v51  ;;  %v1332_v48 = vadd.f32 %v1331_v52, %v1171_v26  ;;  %v1177_v26 = vmul.f32 %v2898_v7, %v2898_v7 }
 0x17e   :  { %v974_v28 = vadd.f32 %v973_v43, %v2879_v58  ;;  %v1264_v8 = vadd.f32 %v1263_v11, %v1172_v34  ;;  %v1178_v34 = vmul.f32 %v2907_v14, %v2907_v14 }
 0x17f   :  { %v1043_v19 = vadd.f32 %v1042_v5, %v2886_v62  ;;  %v1333_v9 = vadd.f32 %v1332_v48, %v1173_v54  ;;  %v1179_v54 = vmul.f32 %v2914_v23, %v2914_v23 }
 0x180   :  { %v975_v12 = vadd.f32 %v974_v28, %v2893_v3  ;;  %v1265_v25 = vadd.f32 %v1264_v8, %v1174_v1  ;;  %v1180_v1 = vmul.f32 %v2921_v30, %v2921_v30 }
 0x181   :  { %v1044_v56 = vadd.f32 %v1043_v19, %v2898_v7  ;;  %v1334_v52 = vadd.f32 %v1333_v9, %v1175_v18  ;;  %v1181_v18 = vmul.f32 %v2926_v36, %v2926_v36 }
 0x182   :  { %v976_v43 = vadd.f32 %v975_v12, %v2907_v14  ;;  %v1266_v11 = vadd.f32 %v1265_v25, %v1176_v46  ;;  %v1182_v46 = vmul.f32 %v2935_v49, %v2935_v49 }
 0x183   :  { %v1045_v5 = vadd.f32 %v1044_v56, %v2914_v23  ;;  %v1335_v48 = vadd.f32 %v1334_v52, %v1177_v26  ;;  %v1183_v26 = vmul.f32 %v2942_v55, %v2942_v55 }
 0x184   :  { %v977_v28 = vadd.f32 %v976_v43, %v2921_v30  ;;  %v1267_v8 = vadd.f32 %v1266_v11, %v1178_v34  ;;  %v1184_v34 = vmul.f32 %v2949_v0, %v2949_v0 }
 0x185   :  { %v1046_v19 = vadd.f32 %v1045_v5, %v2926_v36  ;;  %v1336_v9 = vadd.f32 %v1335_v48, %v1179_v54  ;;  %v1185_v54 = vmul.f32 %v2954_v6, %v2954_v6 }
 0x186   :  { %v1268_v12 = vadd.f32 %v1267_v8, %v1180_v1  ;;  %v978_v25 = vadd.f32 %v977_v28, %v2935_v49  ;;  %v1186_v1 = vmul.f32 %v2963_v24, %v2963_v24 }
 0x187   :  { %v1337_v56 = vadd.f32 %v1336_v9, %v1181_v18  ;;  %v1047_v52 = vadd.f32 %v1046_v19, %v2942_v55  ;;  %v1187_v18 = vmul.f32 %v2970_v33, %v2970_v33 }
 0x188   :  { %v979_v43 = vadd.f32 %v978_v25, %v2949_v0  ;;  %v1269_v11 = vadd.f32 %v1268_v12, %v1182_v46  ;;  %v1188_v46 = vmul.f32 %v2977_v45, %v2977_v45 }
 0x189   :  { %v1048_v5 = vadd.f32 %v1047_v52, %v2954_v6  ;;  %v1338_v48 = vadd.f32 %v1337_v56, %v1183_v26  ;;  %v1189_v26 = vmul.f32 %v2982_v59, %v2982_v59 }
 0x18a   :  { %v980_v28 = vadd.f32 %v979_v43, %v2963_v24  ;;  %v1270_v8 = vadd.f32 %v1269_v11, %v1184_v34  ;;  %v1190_v34 = vmul.f32 %v2991_v15, %v2991_v15 }
 0x18b   :  { %v1049_v19 = vadd.f32 %v1048_v5, %v2970_v33  ;;  %v1339_v9 = vadd.f32 %v1338_v48, %v1185_v54  ;;  %v1191_v54 = vmul.f32 %v2998_v35, %v2998_v35 }
 0x18c   :  { %v981_v12 = vadd.f32 %v980_v28, %v2977_v45  ;;  %v1271_v25 = vadd.f32 %v1270_v8, %v1186_v1  ;;  %v1192_v1 = vmul.f32 %v3005_v4, %v3005_v4 }
 0x18d   :  { %v1050_v56 = vadd.f32 %v1049_v19, %v2982_v59  ;;  %v1340_v52 = vadd.f32 %v1339_v9, %v1187_v18  ;;  %v1193_v18 = vmul.f32 %v3010_v32, %v3010_v32 }
 0x18e   :  { %v982_v43 = vadd.f32 %v981_v12, %v2991_v15  ;;  %v1272_v11 = vadd.f32 %v1271_v25, %v1188_v46  ;;  %v1194_v46 = vmul.f32 %v3019_v63, %v3019_v63 }
 0x18f   :  { %v1051_v5 = vadd.f32 %v1050_v56, %v2998_v35  ;;  %v1341_v48 = vadd.f32 %v1340_v52, %v1189_v26  ;;  %v1195_v26 = vmul.f32 %v3026_v40, %v3026_v40 }
 0x190   :  { %v983_v28 = vadd.f32 %v982_v43, %v3005_v4  ;;  %v1273_v8 = vadd.f32 %v1272_v11, %v1190_v34  ;;  %v1196_v34 = vmul.f32 %v3033_v60, %v3033_v60 }
 0x191   :  { %v1052_v19 = vadd.f32 %v1051_v5, %v3010_v32  ;;  %v1342_v9 = vadd.f32 %v1341_v48, %v1191_v54  ;;  %v1197_v54 = vmul.f32 %v3038_v53, %v3038_v53 }
 0x192   :  { %v984_v12 = vadd.f32 %v983_v28, %v3019_v63  ;;  %v1274_v25 = vadd.f32 %v1273_v8, %v1192_v1  ;;  %v1198_v28 = vmul.f32 %v3047_v29, %v3047_v29 }
 0x193   :  { %v1053_v56 = vadd.f32 %v1052_v19, %v3026_v40  ;;  %v1343_v52 = vadd.f32 %v1342_v9, %v1193_v18  ;;  %v1199_v19 = vmul.f32 %v3054_v44, %v3054_v44 }
 0x194   :  { %v985_v43 = vadd.f32 %v984_v12, %v3033_v60  ;;  %v1275_v11 = vadd.f32 %v1274_v25, %v1194_v46  ;;  %v1200_v25 = vmul.f32 %v3061_v16, %v3061_v16 }
 0x195   :  { %v1054_v5 = vadd.f32 %v1053_v56, %v3038_v53  ;;  %v1344_v48 = vadd.f32 %v1343_v52, %v1195_v26  ;;  %v1201_v52 = vmul.f32 %v3066_v17, %v3066_v17 }
 0x196   :  { %v986_v1 = vadd.f32 %v985_v43, %v3047_v29  ;;  %v1276_v8 = vadd.f32 %v1275_v11, %v1196_v34  ;;  %v1202_v11 = vmul.f32 %v3084_v39, %v3084_v39 }
 0x197   :  { %v1055_v18 = vadd.f32 %v1054_v5, %v3054_v44  ;;  %v1345_v9 = vadd.f32 %v1344_v48, %v1197_v54  ;;  %v1203_v48 = vmul.f32 %v3091_v10, %v3091_v10 }
 0x198   :  { %v1277_v12 = vadd.f32 %v1276_v8, %v1198_v28  ;;  %v987_v46 = vadd.f32 %v986_v1, %v3061_v16  ;;  %v1204_v8 = vmul.f32 %v3098_v2, %v3098_v2  ;;  %v1537_v16 = vld [vmem:[%s4645_s3] sm:$0x3] }
 0x199   :  { %v1346_v56 = vadd.f32 %v1345_v9, %v1199_v19  ;;  %v1056_v26 = vadd.f32 %v1055_v18, %v3066_v17  ;;  %v1205_v9 = vmul.f32 %v3103_v57, %v3103_v57 }
 0x19a   :  { %v1278_v43 = vadd.f32 %v1277_v12, %v1200_v25  ;;  %v988_v34 = vadd.f32 %v987_v46, %v3084_v39  ;;  %v1206_v25 = vmul.f32 %v3112_v41, %v3112_v41 }
 0x19b   :  { %v1347_v5 = vadd.f32 %v1346_v56, %v1201_v52  ;;  %v1057_v54 = vadd.f32 %v1056_v26, %v3091_v10  ;;  %v1207_v52 = vmul.f32 %v3119_v50, %v3119_v50 }
 0x19c   :  { %v1279_v1 = vadd.f32 %v1278_v43, %v1202_v11  ;;  %v989_v28 = vadd.f32 %v988_v34, %v3098_v2  ;;  %v1208_v11 = vmul.f32 %v3126_v13, %v3126_v13  ;;  %v4876_v2 = vlaneseq }
 0x19d   :  { %v1348_v18 = vadd.f32 %v1347_v5, %v1203_v48  ;;  %v1058_v19 = vadd.f32 %v1057_v54, %v3103_v57  ;;  %v1209_v48 = vmul.f32 %v3131_v37, %v3131_v37 }
 0x19e   :  { %v1280_v12 = vadd.f32 %v1279_v1, %v1204_v8  ;;  %v990_v46 = vadd.f32 %v989_v28, %v3112_v41  ;;  %v1210_v8 = vmul.f32 %v3140_v21, %v3140_v21  ;;  %v1084_v10 = vshrl.u32 %v4876_v2, 7 }
 0x19f   :  { %v1349_v56 = vadd.f32 %v1348_v18, %v1205_v9  ;;  %v1059_v26 = vadd.f32 %v1058_v19, %v3119_v50  ;;  %v1211_v9 = vmul.f32 %v3147_v61, %v3147_v61 }
 0x1a0   :  { %v1281_v43 = vadd.f32 %v1280_v12, %v1206_v25  ;;  %v991_v34 = vadd.f32 %v990_v46, %v3126_v13  ;;  %v4858_v46 = vld [vmem:[#allocation72_spill] sm:$0xff] }
 0x1a1   :  { %v1350_v5 = vadd.f32 %v1349_v56, %v1207_v52  ;;  %v1060_v54 = vadd.f32 %v1059_v26, %v3131_v37  ;;  %v1212_v56 = vmul.f32 %v4858_v46, %v4858_v46  ;;  %v4859_v52 = vld [vmem:[#allocation73_spill] sm:$0xff] }
 0x1a2   :  { %v1282_v1 = vadd.f32 %v1281_v43, %v1208_v11  ;;  %v992_v28 = vadd.f32 %v991_v34, %v3140_v21  ;;  %v1213_v34 = vmul.f32 %v4859_v52, %v4859_v52  ;;  %v4860_v21 = vld [vmem:[#allocation76_spill] sm:$0xff] }
 0x1a3   :  { %v1351_v18 = vadd.f32 %v1350_v5, %v1209_v48  ;;  %v1061_v19 = vadd.f32 %v1060_v54, %v3147_v61  ;;  %v1214_v54 = vmul.f32 %v4860_v21, %v4860_v21  ;;  %v4861_v61 = vld [vmem:[#allocation78_spill] sm:$0xff] }
 0x1a4   :  { %v1283_v12 = vadd.f32 %v1282_v1, %v1210_v8  ;;  %v993_v25 = vadd.f32 %v992_v28, %v4858_v46  ;;  %v1215_v28 = vmul.f32 %v4861_v61, %v4861_v61  ;;  %v4862_v46 = vld [vmem:[#allocation80_spill] sm:$0xff] }
 0x1a5   :  { %v1352_v26 = vadd.f32 %v1351_v18, %v1211_v9  ;;  %v1062_v43 = vadd.f32 %v1061_v19, %v4859_v52  ;;  %v1216_v19 = vmul.f32 %v4862_v46, %v4862_v46  ;;  %v4863_v52 = vld [vmem:[#allocation81_spill] sm:$0xff] }
 0x1a6   :  { %v1284_v11 = vadd.f32 %v1283_v12, %v1212_v56  ;;  %v994_v5 = vadd.f32 %v993_v25, %v4860_v21  ;;  %v1217_v25 = vmul.f32 %v4863_v52, %v4863_v52  ;;  %v4864_v21 = vld [vmem:[#allocation84_spill] sm:$0xff] }
 0x1a7   :  { %v1353_v48 = vadd.f32 %v1352_v26, %v1213_v34  ;;  %v1063_v1 = vadd.f32 %v1062_v43, %v4861_v61  ;;  %v1218_v43 = vmul.f32 %v4864_v21, %v4864_v21  ;;  %v4865_v61 = vld [vmem:[#allocation86_spill] sm:$0xff] }
 0x1a8   :  { %v1285_v8 = vadd.f32 %v1284_v11, %v1214_v54  ;;  %v995_v18 = vadd.f32 %v994_v5, %v4862_v46  ;;  %v1219_v5 = vmul.f32 %v4865_v61, %v4865_v61  ;;  %v4866_v46 = vld [vmem:[#allocation88_spill] sm:$0xff] }
 0x1a9   :  { %v1354_v9 = vadd.f32 %v1353_v48, %v1215_v28  ;;  %v1064_v12 = vadd.f32 %v1063_v1, %v4863_v52  ;;  %v1220_v1 = vmul.f32 %v4866_v46, %v4866_v46  ;;  %v4867_v52 = vld [vmem:[#allocation89_spill] sm:$0xff] }
 0x1aa   :  { %v1286_v56 = vadd.f32 %v1285_v8, %v1216_v19  ;;  %v996_v26 = vadd.f32 %v995_v18, %v4864_v21  ;;  %v1221_v18 = vmul.f32 %v4867_v52, %v4867_v52  ;;  %v4868_v21 = vld [vmem:[#allocation92_spill] sm:$0xff] }
 0x1ab   :  { %v1355_v34 = vadd.f32 %v1354_v9, %v1217_v25  ;;  %v1065_v11 = vadd.f32 %v1064_v12, %v4865_v61  ;;  %v1222_v12 = vmul.f32 %v4868_v21, %v4868_v21  ;;  %v4869_v61 = vld [vmem:[#allocation94_spill] sm:$0xff] }
 0x1ac   :  { %v1287_v54 = vadd.f32 %v1286_v56, %v1218_v43  ;;  %v997_v48 = vadd.f32 %v996_v26, %v4866_v46  ;;  %v1223_v26 = vmul.f32 %v4869_v61, %v4869_v61  ;;  %v4870_v46 = vld [vmem:[#allocation96_spill] sm:$0xff] }
 0x1ad   :  { %v1356_v28 = vadd.f32 %v1355_v34, %v1219_v5  ;;  %v1066_v8 = vadd.f32 %v1065_v11, %v4867_v52  ;;  %v1224_v11 = vmul.f32 %v4870_v46, %v4870_v46  ;;  %v4871_v5 = vld [vmem:[#allocation100_spill] sm:$0xff] }
 0x1ae   :  { %v1288_v19 = vadd.f32 %v1287_v54, %v1220_v1  ;;  %v998_v9 = vadd.f32 %v997_v48, %v4868_v21  ;;  %v1226_v54 = vmul.f32 %v4871_v5, %v4871_v5  ;;  %v4872_v48 = vld [vmem:[#allocation97_spill] sm:$0xff] }
 0x1af   :  { %v1357_v25 = vadd.f32 %v1356_v28, %v1221_v18  ;;  %v1067_v56 = vadd.f32 %v1066_v8, %v4869_v61  ;;  %v1225_v28 = vmul.f32 %v4872_v48, %v4872_v48  ;;  %v4873_v18 = vld [vmem:[#allocation102_spill] sm:$0xff] }
 0x1b0   :  { %v1289_v43 = vadd.f32 %v1288_v19, %v1222_v12  ;;  %v999_v34 = vadd.f32 %v998_v9, %v4870_v46  ;;  %v1227_v8 = vmul.f32 %v4873_v18, %v4873_v18  ;;  %v4874_v46 = vld [vmem:[#allocation104_spill] sm:$0xff] }
 0x1b1   :  { %v1358_v1 = vadd.f32 %v1357_v25, %v1223_v26  ;;  %v1068_v52 = vadd.f32 %v1067_v56, %v4872_v48  ;;  %v1228_v25 = vmul.f32 %v4874_v46, %v4874_v46  ;;  %v4875_v56 = vld [vmem:[#allocation105_spill] sm:$0xff] }
 0x1b2   :  { %v1290_v21 = vadd.f32 %v1289_v43, %v1224_v11  ;;  %v1000_v19 = vadd.f32 %v999_v34, %v4871_v5  ;;  %v1229_v48 = vmul.f32 %v4875_v56, %v4875_v56 }
 0x1b3   :  { %v1359_v12 = vadd.f32 %v1358_v1, %v1225_v28  ;;  %v1069_v9 = vadd.f32 %v1068_v52, %v4873_v18  ;;  %v2511_v52 = vmov 1966171168  }
 0x1b4   :  { %v1291_v61 = vadd.f32 %v1290_v21, %v1226_v54  ;;  %v1001_v37 = vadd.f32 %v1000_v19, %v4874_v46  ;;  %v1081_v21 = vunpack.c.l.s4 %v2511_v52 }
 0x1b5   :  { %v1360_v26 = vadd.f32 %v1359_v12, %v1227_v8  ;;  %v1070_v13 = vadd.f32 %v1069_v9, %v4875_v56 }
 0x1b6   :  { %v1002_v50 = vrot.slane %v1001_v37, 4  ;;  %v1292_v41 = vadd.f32 %v1291_v61, %v1228_v25  ;;  %v1082_v57 = vunpack.c.0.s8 %v1081_v21  ;;  %v1101_v21 = vld [vmem:[#allocation4] sm:$0x3] }
 0x1b7   :  { %v1071_v43 = vrot.slane %v1070_v13, 4  ;;  %v1361_v11 = vadd.f32 %v1360_v26, %v1229_v48 }
 0x1b8   :  { %v1003_v34 = vadd.f32 %v1002_v50, %v1001_v37  ;;  %v1293_v1 = vrot.slane %v1292_v41, 4 }
 0x1b9   :  { %v1072_v28 = vadd.f32 %v1071_v43, %v1070_v13  ;;  %v1362_v54 = vrot.slane %v1361_v11, 4  ;;  %v1085_v43 = vsub.s32 %v1082_v57, %v1084_v10 }
 0x1ba   :  { %v1004_v19 = vrot.slane %v1003_v34, 2  ;;  %v1294_v18 = vadd.f32 %v1293_v1, %v1292_v41 }
 0x1bb   :  { %v1073_v5 = vrot.slane %v1072_v28, 2  ;;  %v1363_v46 = vadd.f32 %v1362_v54, %v1361_v11  ;;  %v938_v54 = vld [vmem:[#allocation3] sm:$0x3] }
 0x1bc   :  { %v1005_v8 = vadd.f32 %v1004_v19, %v1003_v34  ;;  %v1295_v12 = vrot.slane %v1294_v18, 2 }
 0x1bd   :  { %v1074_v9 = vadd.f32 %v1073_v5, %v1072_v28  ;;  %v1364_v39 = vrot.slane %v1363_v46, 2 }
 0x1be   :  { %v1006_v61 = vrot.slane %v1005_v8, 1  ;;  %v1296_v25 = vadd.f32 %v1295_v12, %v1294_v18 }
 0x1bf   :  { %v1075_v48 = vrot.slane %v1074_v9, 1  ;;  %v1365_v37 = vadd.f32 %v1364_v39, %v1363_v46 }
 0x1c0   :  { %v1007_v50 = vadd.f32 %v1006_v61, %v1005_v8  ;;  %v1297_v13 = vrot.slane %v1296_v25, 1 }
 0x1c1   :  { %v1076_v26 = vadd.f32 %v1075_v48, %v1074_v9  ;;  %v1366_v52 = vrot.slane %v1365_v37, 1  ;;  %v1671_v48 = vsub.s32 0, %v1084_v10 }
 0x1c2   :  { %v1298_v17 = vadd.f32 %v1297_v13, %v1296_v25  ;;  %v1533_v25 = vld [vmem:[%s4644_s2] sm:$0x3]  ;;  %s2512_s2 = smov [#allocation2]  }
 0x1c3   :  { %v1079_v41 = vcombine.low %v1007_v50, %v1076_v26  ;;  %v1367_v1 = vadd.f32 %v1366_v52, %v1365_v37  ;;  %v1675_v37 = vsub.s32 1, %v1084_v10  ;;  %v4879_v10 = vld [vmem:[#allocation12_spill] sm:$0xff]  ;;  %s2209_s3 = sshll.u32 %s2512_s2, 4  ;;  %s2210_s3 = int_to_ptr.vmem [resolvable:$true] %s2209_s3 }
 0x1c4   :  { %s2486_s21 = scalar_lea.vmem %s2210_s3, 16384  ;;  %p2491_p1 = scmp.lt.s32.totalorder %s2210_s3, %s2210_s3 }
 0x1c5   :  { %v1086_v11 = vrot.slane %v1079_v41, %v1085_v43  ;;  %v1370_v34 = vcombine.low %v1298_v17, %v1367_v1  ;;  %p2487_p0 = scmp.ne.s32.totalorder %s2210_s3, %s2486_s21  ;;  %p2492_p2 = scmp.lt.s32.totalorder %s2486_s21, %s2486_s21 }
 0x1c7   :  { %v1093_v5 = vrot.slane %v1086_v11, %v1085_v43  ;;  %v1377_v28 = vrot.slane %v1370_v34, %v1085_v43  ;;  %v4878_v11 = vld [vmem:[#allocation11_spill] sm:$0xff]  ;;  %p2493_p3 = por %p2492_p2, %p2491_p1 }
 0x1c9   :  { %v1095_v2 = vadd.f32 %v1093_v5, %v938_v54  ;;  %v1384_v19 = vrot.slane %v1377_v28, %v1085_v43  ;;  %v4880_v5 = vld [vmem:[#allocation13_spill] sm:$0xff]  ;;  %p2494_p4 = pnand %p2493_p3, %p2487_p0 }
 0x1cb   :  { %1100 = vst.msk [vmem:[#allocation3] sm:$0x3] %vm3069_vm1, %v1095_v2  ;;  %v1386_v39 = vadd.f32 %v1384_v19, %v1101_v21  ;;  %v4881_v21 = vld [vmem:[#allocation14_spill] sm:$0xff]  ;;  %v4882_v19 = vld [vmem:[#allocation15_spill] sm:$0xff] }
 0x1cd   :  { %1387 = vst.msk [vmem:[#allocation4] sm:$0x3] %vm3069_vm1, %v1386_v39 }
 0x1d2   :  { %v1525_v57 = vld [vmem:[#allocation3] sm:$0x3] }
 0x1d3   :  { %v1527_v46 = vmul.f32 0.001953125, %v1525_v57 }
 0x1d4   :  { %v1528_v18 = vld [vmem:[#allocation4] sm:$0x3] }
 0x1d5   :  { %v1529_v8 = vmul.f32 0.001953125, %v1528_v18  ;;  %v1530_v12 = vmul.f32 %v1527_v46, %v1527_v46 }
 0x1d7   :  { %v1531_v9 = vsub.f32 %v1529_v8, %v1530_v12  ;;  %v4884_v8 = vld [vmem:[#allocation17_spill] sm:$0xff] }
 0x1d9   :  { %v1532_v17 = vmax.f32 %v1531_v9, 0.0  ;;  %v4885_v9 = vld [vmem:[#allocation18_spill] sm:$0xff] }
 0x1db   :  { %v1534_v61 = vadd.f32 1e-05, %v1532_v17 }
 0x1dd   :  { %2484 = vrsqrt.f32 %v1534_v61  ;;  %v4886_v61 = vld [vmem:[#allocation19_spill] sm:$0xff] }
 0x1e7   :  { %v2485_v50 = vpop.eup %2484 }
 0x1e8   :  { %v1536_v13 = vmul.f32 %v2485_v50, %v1533_v25  ;;  %v4887_v50 = vld [vmem:[#allocation20_spill] sm:$0xff] }
 0x1ea   :  { %v1538_v26 = vmul.f32 %v1536_v13, %v1527_v46  ;;  %v3476_v43 = vrot.slane %v1536_v13, %v1671_v48  ;;  %v3478_v52 = vrot.slane %v1536_v13, %v1675_v37 }
 0x1ec   :  { %v1539_v41 = vsub.f32 %v1537_v16, %v1538_v26  ;;  %v1806_v1 = vmul.f32 %v3478_v52, %v4875_v56  ;;  %v3484_v34 = vmul.f32 %v3476_v43, %v4878_v11  ;;  %v3488_v54 = vmul.f32 %v3478_v52, %v4879_v10  ;;  %v4883_v56 = vld [vmem:[#allocation16_spill] sm:$0xff]  ;;  %v4889_v16 = vld [vmem:[#allocation22_spill] sm:$0xff]  ;;  %v4890_v11 = vld [vmem:[#allocation23_spill] sm:$0xff] }
 0x1ed   :  { %v3492_v28 = vmul.f32 %v3476_v43, %v4880_v5  ;;  %v3496_v2 = vmul.f32 %v3478_v52, %v4881_v21  ;;  %v3500_v39 = vmul.f32 %v3476_v43, %v4882_v19  ;;  %v3504_v57 = vmul.f32 %v3478_v52, %v4883_v56  ;;  %v4891_v5 = vld [vmem:[#allocation24_spill] sm:$0xff]  ;;  %v4893_v19 = vld [vmem:[#allocation25_spill] sm:$0xff] }
 0x1ee   :  { %v3506_v46 = vrot.slane %v1539_v41, %v1671_v48  ;;  %v3508_v18 = vrot.slane %v1539_v41, %v1675_v37  ;;  %v3512_v12 = vmul.f32 %v3476_v43, %v4884_v8  ;;  %v3516_v17 = vmul.f32 %v3478_v52, %v4885_v9  ;;  %v4888_v48 = vld [vmem:[#allocation21_spill] sm:$0xff]  ;;  %v4895_v8 = vld [vmem:[#allocation26_spill] sm:$0xff] }
 0x1ef   :  { %v3520_v25 = vmul.f32 %v3476_v43, %v4886_v61  ;;  %v3524_v13 = vmul.f32 %v3478_v52, %v4887_v50  ;;  %v3528_v37 = vmul.f32 %v3476_v43, %v4888_v48  ;;  %v3532_v26 = vmul.f32 %v3478_v52, %v4889_v16  ;;  %v4897_v61 = vld [vmem:[#allocation27_spill] sm:$0xff]  ;;  %v4901_v16 = vld [vmem:[#allocation29_spill] sm:$0xff] }
 0x1f0   :  { %v1945_v41 = vadd.f32 %v3508_v18, %v1806_v1  ;;  %v3537_v10 = vmul.f32 %v3476_v43, %v4890_v11  ;;  %v3541_v21 = vmul.f32 %v3478_v52, %v4891_v5  ;;  %v3545_v56 = vmul.f32 %v3476_v43, %v4893_v19  ;;  %v4899_v1 = vld [vmem:[#allocation28_spill] sm:$0xff] }
 0x1f1   :  { %v3549_v9 = vmul.f32 %v3478_v52, %v4895_v8  ;;  %v3553_v50 = vmul.f32 %v3476_v43, %v4897_v61  ;;  %v3557_v48 = vmul.f32 %v3478_v52, %v4899_v1  ;;  %v3561_v11 = vmul.f32 %v3476_v43, %v4901_v16 }
 0x1f2   :  { %4892 = vst [vmem:[#allocation105_spill] sm:$0xff] %v3541_v21  ;;  %4894 = vst [vmem:[#allocation49_spill] sm:$0xff] %v3545_v56  ;;  %v2073_v5 = vmax.f32 %v1945_v41, 0.0  ;;  %v4902_v21 = vld [vmem:[#allocation30_spill] sm:$0xff]  ;;  %v4904_v56 = vld [vmem:[#allocation31_spill] sm:$0xff] }
 0x1f3   :  { %4896 = vst [vmem:[#allocation11_spill] sm:$0xff] %v3549_v9  ;;  %4898 = vst [vmem:[#allocation12_spill] sm:$0xff] %v3553_v50  ;;  %v3565_v19 = vmul.f32 %v3478_v52, %v4902_v21  ;;  %v3569_v8 = vmul.f32 %v3476_v43, %v4904_v56  ;;  %v4906_v9 = vld [vmem:[#allocation32_spill] sm:$0xff]  ;;  %v4908_v50 = vld [vmem:[#allocation33_spill] sm:$0xff] }
 0x1f4   :  { %4900 = vst [vmem:[#allocation13_spill] sm:$0xff] %v3557_v48  ;;  %v3573_v61 = vmul.f32 %v3478_v52, %v4906_v9  ;;  %v3577_v1 = vmul.f32 %v3476_v43, %v4908_v50  ;;  %v4910_v48 = vld [vmem:[#allocation34_spill] sm:$0xff]  ;;  %v4912_v41 = vld [vmem:[#allocation35_spill] sm:$0xff]  ;;  %2201 = vst [vmem:[#allocation2 + $0x3f8] sm:$0xff] %v2073_v5 }
 0x1f5   :  { %4903 = vst [vmem:[#allocation14_spill] sm:$0xff] %v3565_v19  ;;  %4905 = vst [vmem:[#allocation15_spill] sm:$0xff] %v3569_v8  ;;  %v3581_v16 = vmul.f32 %v3478_v52, %v4910_v48  ;;  %v3585_v21 = vmul.f32 %v3476_v43, %v4912_v41  ;;  %v4914_v19 = vld [vmem:[#allocation36_spill] sm:$0xff]  ;;  %v4915_v8 = vld [vmem:[#allocation37_spill] sm:$0xff] }
 0x1f6   :  { %4907 = vst [vmem:[#allocation16_spill] sm:$0xff] %v3573_v61  ;;  %4909 = vst [vmem:[#allocation17_spill] sm:$0xff] %v3577_v1  ;;  %v3589_v56 = vmul.f32 %v3478_v52, %v4914_v19  ;;  %v3593_v9 = vmul.f32 %v3476_v43, %v4915_v8  ;;  %v4917_v61 = vld [vmem:[#allocation38_spill] sm:$0xff]  ;;  %v4919_v1 = vld [vmem:[#allocation39_spill] sm:$0xff] }
 0x1f7   :  { %4911 = vst [vmem:[#allocation18_spill] sm:$0xff] %v3581_v16  ;;  %4913 = vst [vmem:[#allocation19_spill] sm:$0xff] %v3585_v21  ;;  %v3597_v50 = vmul.f32 %v3478_v52, %v4917_v61  ;;  %v3601_v48 = vmul.f32 %v3476_v43, %v4919_v1  ;;  %v4921_v16 = vld [vmem:[#allocation40_spill] sm:$0xff]  ;;  %v4923_v21 = vld [vmem:[#allocation41_spill] sm:$0xff] }
 0x1f8   :  { %4916 = vst [vmem:[#allocation20_spill] sm:$0xff] %v3593_v9  ;;  %v3605_v41 = vmul.f32 %v3478_v52, %v4921_v16  ;;  %v3609_v19 = vmul.f32 %v3476_v43, %v4923_v21  ;;  %v4925_v5 = vld [vmem:[#allocation42_spill] sm:$0xff]  ;;  %v4927_v9 = vld [vmem:[#allocation43_spill] sm:$0xff] }
 0x1f9   :  { %4918 = vst [vmem:[#allocation21_spill] sm:$0xff] %v3597_v50  ;;  %4920 = vst [vmem:[#allocation22_spill] sm:$0xff] %v3601_v48  ;;  %v3613_v8 = vmul.f32 %v3478_v52, %v4925_v5  ;;  %v3617_v61 = vmul.f32 %v3476_v43, %v4927_v9  ;;  %v4929_v50 = vld [vmem:[#allocation44_spill] sm:$0xff]  ;;  %v4931_v48 = vld [vmem:[#allocation45_spill] sm:$0xff] }
 0x1fa   :  { %4922 = vst [vmem:[#allocation23_spill] sm:$0xff] %v3605_v41  ;;  %4924 = vst [vmem:[#allocation24_spill] sm:$0xff] %v3609_v19  ;;  %v3621_v1 = vmul.f32 %v3478_v52, %v4929_v50  ;;  %v3625_v16 = vmul.f32 %v3476_v43, %v4931_v48  ;;  %v4933_v41 = vld [vmem:[#allocation46_spill] sm:$0xff] }
 0x1fb   :  { %4926 = vst [vmem:[#allocation25_spill] sm:$0xff] %v3613_v8  ;;  %4928 = vst [vmem:[#allocation26_spill] sm:$0xff] %v3617_v61  ;;  %v3629_v21 = vmul.f32 %v3478_v52, %v4933_v41  ;;  %v4935_v19 = vld [vmem:[#allocation50_spill] sm:$0xff]  ;;  %v4937_v8 = vld [vmem:[#allocation51_spill] sm:$0xff] }
 0x1fc   :  { %4930 = vst [vmem:[#allocation27_spill] sm:$0xff] %v3621_v1  ;;  %4932 = vst [vmem:[#allocation28_spill] sm:$0xff] %v3625_v16  ;;  %v3633_v5 = vmul.f32 %v3476_v43, %v4935_v19  ;;  %v3637_v9 = vmul.f32 %v3478_v52, %v4937_v8  ;;  %v4939_v61 = vld [vmem:[#allocation53_spill] sm:$0xff]  ;;  %v4941_v1 = vld [vmem:[#allocation55_spill] sm:$0xff] }
 0x1fd   :  { %4934 = vst [vmem:[#allocation29_spill] sm:$0xff] %v3629_v21  ;;  %v3641_v50 = vmul.f32 %v3476_v43, %v4939_v61  ;;  %v3645_v48 = vmul.f32 %v3478_v52, %v4941_v1  ;;  %v4943_v16 = vld [vmem:[#allocation58_spill] sm:$0xff]  ;;  %v4945_v21 = vld [vmem:[#allocation59_spill] sm:$0xff] }
 0x1fe   :  { %4936 = vst [vmem:[#allocation30_spill] sm:$0xff] %v3633_v5  ;;  %4938 = vst [vmem:[#allocation31_spill] sm:$0xff] %v3637_v9  ;;  %v3649_v41 = vmul.f32 %v3476_v43, %v4943_v16  ;;  %v3653_v19 = vmul.f32 %v3478_v52, %v4945_v21  ;;  %v4947_v5 = vld [vmem:[#allocation61_spill] sm:$0xff]  ;;  %v4949_v9 = vld [vmem:[#allocation63_spill] sm:$0xff] }
 0x1ff   :  { %4940 = vst [vmem:[#allocation32_spill] sm:$0xff] %v3641_v50  ;;  %4942 = vst [vmem:[#allocation33_spill] sm:$0xff] %v3645_v48  ;;  %v3657_v8 = vmul.f32 %v3476_v43, %v4947_v5  ;;  %v3661_v61 = vmul.f32 %v3478_v52, %v4949_v9  ;;  %v4951_v50 = vld [vmem:[#allocation66_spill] sm:$0xff]  ;;  %v4953_v48 = vld [vmem:[#allocation67_spill] sm:$0xff] }
 0x200   :  { %4944 = vst [vmem:[#allocation34_spill] sm:$0xff] %v3649_v41  ;;  %4946 = vst [vmem:[#allocation35_spill] sm:$0xff] %v3653_v19  ;;  %v3665_v1 = vmul.f32 %v3476_v43, %v4951_v50  ;;  %v3669_v16 = vmul.f32 %v3478_v52, %v4953_v48  ;;  %v4955_v41 = vld [vmem:[#allocation69_spill] sm:$0xff]  ;;  %v4957_v19 = vld [vmem:[#allocation71_spill] sm:$0xff] }
 0x201   :  { %4948 = vst [vmem:[#allocation36_spill] sm:$0xff] %v3657_v8  ;;  %4950 = vst [vmem:[#allocation37_spill] sm:$0xff] %v3661_v61  ;;  %v3673_v21 = vmul.f32 %v3476_v43, %v4955_v41  ;;  %v3677_v5 = vmul.f32 %v3478_v52, %v4957_v19  ;;  %v4959_v8 = vld [vmem:[#allocation74_spill] sm:$0xff]  ;;  %v4961_v61 = vld [vmem:[#allocation75_spill] sm:$0xff] }
 0x202   :  { %4952 = vst [vmem:[#allocation38_spill] sm:$0xff] %v3665_v1  ;;  %4954 = vst [vmem:[#allocation39_spill] sm:$0xff] %v3669_v16  ;;  %v3681_v9 = vmul.f32 %v3476_v43, %v4959_v8  ;;  %v3685_v50 = vmul.f32 %v3478_v52, %v4961_v61  ;;  %v4963_v1 = vld [vmem:[#allocation77_spill] sm:$0xff]  ;;  %v4965_v16 = vld [vmem:[#allocation79_spill] sm:$0xff] }
 0x203   :  { %4956 = vst [vmem:[#allocation40_spill] sm:$0xff] %v3673_v21  ;;  %4958 = vst [vmem:[#allocation41_spill] sm:$0xff] %v3677_v5  ;;  %v3689_v48 = vmul.f32 %v3476_v43, %v4963_v1  ;;  %v3693_v41 = vmul.f32 %v3478_v52, %v4965_v16  ;;  %v4967_v21 = vld [vmem:[#allocation82_spill] sm:$0xff]  ;;  %v4969_v5 = vld [vmem:[#allocation83_spill] sm:$0xff] }
 0x204   :  { %4960 = vst [vmem:[#allocation42_spill] sm:$0xff] %v3681_v9  ;;  %4962 = vst [vmem:[#allocation43_spill] sm:$0xff] %v3685_v50  ;;  %v3697_v19 = vmul.f32 %v3476_v43, %v4967_v21  ;;  %v3701_v8 = vmul.f32 %v3478_v52, %v4969_v5  ;;  %v4971_v9 = vld [vmem:[#allocation85_spill] sm:$0xff]  ;;  %v4973_v50 = vld [vmem:[#allocation87_spill] sm:$0xff] }
 0x205   :  { %4964 = vst [vmem:[#allocation44_spill] sm:$0xff] %v3689_v48  ;;  %4966 = vst [vmem:[#allocation45_spill] sm:$0xff] %v3693_v41  ;;  %v3705_v61 = vmul.f32 %v3476_v43, %v4971_v9  ;;  %v3709_v1 = vmul.f32 %v3478_v52, %v4973_v50  ;;  %v4975_v48 = vld [vmem:[#allocation90_spill] sm:$0xff]  ;;  %v4977_v41 = vld [vmem:[#allocation91_spill] sm:$0xff] }
 0x206   :  { %4968 = vst [vmem:[#allocation46_spill] sm:$0xff] %v3697_v19  ;;  %4970 = vst [vmem:[#allocation50_spill] sm:$0xff] %v3701_v8  ;;  %v3713_v16 = vmul.f32 %v3476_v43, %v4975_v48  ;;  %v3717_v21 = vmul.f32 %v3478_v52, %v4977_v41  ;;  %v4979_v19 = vld [vmem:[#allocation93_spill] sm:$0xff]  ;;  %v4980_v8 = vld [vmem:[#allocation95_spill] sm:$0xff] }
 0x207   :  { %4972 = vst [vmem:[#allocation51_spill] sm:$0xff] %v3705_v61  ;;  %4974 = vst [vmem:[#allocation53_spill] sm:$0xff] %v3709_v1  ;;  %v3721_v5 = vmul.f32 %v3476_v43, %v4979_v19  ;;  %v3725_v9 = vmul.f32 %v3478_v52, %v4980_v8  ;;  %v4981_v61 = vld [vmem:[#allocation98_spill] sm:$0xff]  ;;  %v4982_v1 = vld [vmem:[#allocation99_spill] sm:$0xff]  ;;  %v3745_v8 = vmul.f32 %v3476_v43, %v2820_v20 }
 0x208   :  { %4976 = vst [vmem:[#allocation55_spill] sm:$0xff] %v3713_v16  ;;  %4978 = vst [vmem:[#allocation58_spill] sm:$0xff] %v3717_v21  ;;  %v3729_v50 = vmul.f32 %v3476_v43, %v4981_v61  ;;  %v3733_v48 = vmul.f32 %v3478_v52, %v4982_v1  ;;  %v4983_v16 = vld [vmem:[#allocation101_spill] sm:$0xff]  ;;  %v4984_v21 = vld [vmem:[#allocation103_spill] sm:$0xff]  ;;  %v3749_v61 = vmul.f32 %v3478_v52, %v2824_v22 }
 0x209   :  { %v3737_v41 = vmul.f32 %v3476_v43, %v4983_v16  ;;  %v3741_v19 = vmul.f32 %v3478_v52, %v4984_v21  ;;  %v3753_v1 = vmul.f32 %v3476_v43, %v2834_v27  ;;  %v3757_v16 = vmul.f32 %v3478_v52, %v2842_v31 }
 0x20a   :  { %v3761_v21 = vmul.f32 %v3476_v43, %v2851_v38  ;;  %v3765_v20 = vmul.f32 %v3478_v52, %v2858_v42  ;;  %v3769_v22 = vmul.f32 %v3476_v43, %v2865_v47  ;;  %v3773_v27 = vmul.f32 %v3478_v52, %v2870_v51 }
 0x20b   :  { %v3777_v31 = vmul.f32 %v3476_v43, %v2879_v58  ;;  %v3781_v38 = vmul.f32 %v3478_v52, %v2886_v62  ;;  %v3785_v42 = vmul.f32 %v3476_v43, %v2893_v3  ;;  %v3789_v47 = vmul.f32 %v3478_v52, %v2898_v7 }
 0x20c   :  { %v3793_v51 = vmul.f32 %v3476_v43, %v2907_v14  ;;  %v3797_v58 = vmul.f32 %v3478_v52, %v2914_v23  ;;  %v3801_v62 = vmul.f32 %v3476_v43, %v2921_v30  ;;  %v3805_v3 = vmul.f32 %v3478_v52, %v2926_v36 }
 0x20d   :  { %v3809_v7 = vmul.f32 %v3476_v43, %v2935_v49  ;;  %v3813_v14 = vmul.f32 %v3478_v52, %v2942_v55  ;;  %v3817_v23 = vmul.f32 %v3476_v43, %v2949_v0  ;;  %v3821_v30 = vmul.f32 %v3478_v52, %v2954_v6 }
 0x20e   :  { %v3825_v36 = vmul.f32 %v3476_v43, %v2963_v24  ;;  %v3829_v49 = vmul.f32 %v3478_v52, %v2970_v33  ;;  %v3833_v55 = vmul.f32 %v3476_v43, %v2977_v45  ;;  %v3837_v0 = vmul.f32 %v3478_v52, %v2982_v59 }
 0x20f   :  { %v3841_v6 = vmul.f32 %v3476_v43, %v2991_v15  ;;  %v3845_v24 = vmul.f32 %v3478_v52, %v2998_v35  ;;  %v3849_v33 = vmul.f32 %v3476_v43, %v3005_v4  ;;  %v3853_v45 = vmul.f32 %v3478_v52, %v3010_v32 }
 0x210   :  { %v3857_v59 = vmul.f32 %v3476_v43, %v3019_v63  ;;  %v3861_v15 = vmul.f32 %v3478_v52, %v3026_v40  ;;  %v3865_v35 = vmul.f32 %v3476_v43, %v3033_v60  ;;  %v3869_v4 = vmul.f32 %v3478_v52, %v3038_v53 }
 0x211   :  { %v3873_v32 = vmul.f32 %v3476_v43, %v3047_v29  ;;  %v3877_v63 = vmul.f32 %v3478_v52, %v3054_v44 }
 0x212   :  { %4985 = vst [vmem:[#allocation59_spill] sm:$0xff] %v3857_v59  ;;  %4986 = vst [vmem:[#allocation61_spill] sm:$0xff] %v3861_v15  ;;  %v4991_v59 = vld [vmem:[#allocation47_spill] sm:$0xff]  ;;  %v4993_v15 = vld [vmem:[#allocation48_spill] sm:$0xff] }
 0x213   :  { %4987 = vst [vmem:[#allocation63_spill] sm:$0xff] %v3865_v35  ;;  %4988 = vst [vmem:[#allocation66_spill] sm:$0xff] %v3869_v4  ;;  %v3881_v40 = vmul.f32 %v3476_v43, %v4991_v59  ;;  %v3885_v60 = vmul.f32 %v3478_v52, %v4993_v15  ;;  %v4995_v35 = vld [vmem:[#allocation52_spill] sm:$0xff]  ;;  %v4997_v4 = vld [vmem:[#allocation54_spill] sm:$0xff] }
 0x214   :  { %4989 = vst [vmem:[#allocation67_spill] sm:$0xff] %v3873_v32  ;;  %4990 = vst [vmem:[#allocation69_spill] sm:$0xff] %v3877_v63  ;;  %v3889_v53 = vmul.f32 %v3476_v43, %v4995_v35  ;;  %v3893_v29 = vmul.f32 %v3478_v52, %v4997_v4  ;;  %v4999_v32 = vld [vmem:[#allocation56_spill] sm:$0xff]  ;;  %v5001_v63 = vld [vmem:[#allocation57_spill] sm:$0xff] }
 0x215   :  { %4992 = vst [vmem:[#allocation71_spill] sm:$0xff] %v3881_v40  ;;  %4994 = vst [vmem:[#allocation74_spill] sm:$0xff] %v3885_v60  ;;  %v3897_v44 = vmul.f32 %v3476_v43, %v4999_v32  ;;  %v3901_v59 = vmul.f32 %v3478_v52, %v5001_v63  ;;  %v5003_v40 = vld [vmem:[#allocation60_spill] sm:$0xff]  ;;  %v5005_v60 = vld [vmem:[#allocation62_spill] sm:$0xff] }
 0x216   :  { %4996 = vst [vmem:[#allocation75_spill] sm:$0xff] %v3889_v53  ;;  %4998 = vst [vmem:[#allocation77_spill] sm:$0xff] %v3893_v29  ;;  %v3905_v15 = vmul.f32 %v3476_v43, %v5003_v40  ;;  %v3909_v35 = vmul.f32 %v3478_v52, %v5005_v60  ;;  %v5007_v53 = vld [vmem:[#allocation64_spill] sm:$0xff]  ;;  %v5009_v29 = vld [vmem:[#allocation65_spill] sm:$0xff] }
 0x217   :  { %5000 = vst [vmem:[#allocation79_spill] sm:$0xff] %v3897_v44  ;;  %5002 = vst [vmem:[#allocation82_spill] sm:$0xff] %v3901_v59  ;;  %v3913_v4 = vmul.f32 %v3476_v43, %v5007_v53  ;;  %v3917_v32 = vmul.f32 %v3478_v52, %v5009_v29  ;;  %v5011_v44 = vld [vmem:[#allocation68_spill] sm:$0xff]  ;;  %v5013_v59 = vld [vmem:[#allocation70_spill] sm:$0xff] }
 0x218   :  { %5004 = vst [vmem:[#allocation83_spill] sm:$0xff] %v3905_v15  ;;  %5006 = vst [vmem:[#allocation85_spill] sm:$0xff] %v3909_v35  ;;  %v3921_v63 = vmul.f32 %v3476_v43, %v5011_v44  ;;  %v3925_v40 = vmul.f32 %v3478_v52, %v5013_v59  ;;  %v5015_v15 = vld [vmem:[#allocation72_spill] sm:$0xff]  ;;  %v5017_v35 = vld [vmem:[#allocation73_spill] sm:$0xff] }
 0x219   :  { %5008 = vst [vmem:[#allocation87_spill] sm:$0xff] %v3913_v4  ;;  %5010 = vst [vmem:[#allocation90_spill] sm:$0xff] %v3917_v32  ;;  %v3929_v60 = vmul.f32 %v3476_v43, %v5015_v15  ;;  %v3933_v53 = vmul.f32 %v3478_v52, %v5017_v35  ;;  %v5019_v4 = vld [vmem:[#allocation76_spill] sm:$0xff]  ;;  %v5021_v32 = vld [vmem:[#allocation78_spill] sm:$0xff] }
 0x21a   :  { %5012 = vst [vmem:[#allocation91_spill] sm:$0xff] %v3921_v63  ;;  %5014 = vst [vmem:[#allocation93_spill] sm:$0xff] %v3925_v40  ;;  %v3937_v29 = vmul.f32 %v3476_v43, %v5019_v4  ;;  %v3941_v44 = vmul.f32 %v3478_v52, %v5021_v32  ;;  %v5023_v63 = vld [vmem:[#allocation80_spill] sm:$0xff]  ;;  %v5025_v40 = vld [vmem:[#allocation81_spill] sm:$0xff] }
 0x21b   :  { %5016 = vst [vmem:[#allocation95_spill] sm:$0xff] %v3929_v60  ;;  %5018 = vst [vmem:[#allocation98_spill] sm:$0xff] %v3933_v53  ;;  %v3945_v59 = vmul.f32 %v3476_v43, %v5023_v63  ;;  %v3949_v15 = vmul.f32 %v3478_v52, %v5025_v40  ;;  %v5027_v60 = vld [vmem:[#allocation84_spill] sm:$0xff]  ;;  %v5029_v53 = vld [vmem:[#allocation86_spill] sm:$0xff] }
 0x21c   :  { %5020 = vst [vmem:[#allocation99_spill] sm:$0xff] %v3937_v29  ;;  %5022 = vst [vmem:[#allocation101_spill] sm:$0xff] %v3941_v44  ;;  %v3953_v35 = vmul.f32 %v3476_v43, %v5027_v60  ;;  %v3957_v4 = vmul.f32 %v3478_v52, %v5029_v53  ;;  %v5031_v29 = vld [vmem:[#allocation88_spill] sm:$0xff]  ;;  %v5033_v44 = vld [vmem:[#allocation89_spill] sm:$0xff] }
 0x21d   :  { %5024 = vst [vmem:[#allocation103_spill] sm:$0xff] %v3945_v59  ;;  %5026 = vst [vmem:[#allocation47_spill] sm:$0xff] %v3949_v15  ;;  %v3961_v32 = vmul.f32 %v3476_v43, %v5031_v29  ;;  %v3965_v63 = vmul.f32 %v3478_v52, %v5033_v44  ;;  %v5035_v59 = vld [vmem:[#allocation92_spill] sm:$0xff]  ;;  %v5037_v15 = vld [vmem:[#allocation94_spill] sm:$0xff] }
 0x21e   :  { %5028 = vst [vmem:[#allocation48_spill] sm:$0xff] %v3953_v35  ;;  %5030 = vst [vmem:[#allocation52_spill] sm:$0xff] %v3957_v4  ;;  %v3969_v40 = vmul.f32 %v3476_v43, %v5035_v59  ;;  %v3973_v60 = vmul.f32 %v3478_v52, %v5037_v15  ;;  %v5038_v35 = vld [vmem:[#allocation96_spill] sm:$0xff]  ;;  %v5039_v4 = vld [vmem:[#allocation97_spill] sm:$0xff] }
 0x21f   :  { %5032 = vst [vmem:[#allocation54_spill] sm:$0xff] %v3961_v32  ;;  %5034 = vst [vmem:[#allocation56_spill] sm:$0xff] %v3965_v63  ;;  %v3977_v53 = vmul.f32 %v3476_v43, %v5038_v35  ;;  %v3981_v29 = vmul.f32 %v3478_v52, %v5039_v4  ;;  %v5040_v32 = vld [vmem:[#allocation100_spill] sm:$0xff]  ;;  %v5041_v63 = vld [vmem:[#allocation102_spill] sm:$0xff]  ;;  %v3997_v35 = vadd.f32 %v3506_v46, %v3484_v34 }
 0x220   :  { %5036 = vst [vmem:[#allocation57_spill] sm:$0xff] %v3969_v40  ;;  %v3985_v44 = vmul.f32 %v3476_v43, %v5040_v32  ;;  %v3989_v59 = vmul.f32 %v3478_v52, %v5041_v63  ;;  %v5042_v40 = vld [vmem:[#allocation104_spill] sm:$0xff]  ;;  %v4001_v4 = vadd.f32 %v3508_v18, %v3488_v54  ;;  %v4005_v32 = vadd.f32 %v3506_v46, %v3492_v28  ;;  %v5046_v63 = vld [vmem:[#allocation105_spill] sm:$0xff] }
 0x221   :  { %v3993_v15 = vmul.f32 %v3476_v43, %v5042_v40  ;;  %v4009_v52 = vadd.f32 %v3508_v18, %v3496_v2  ;;  %v4013_v43 = vadd.f32 %v3506_v46, %v3500_v39  ;;  %v4017_v34 = vadd.f32 %v3508_v18, %v3504_v57  ;;  %v5048_v40 = vld [vmem:[#allocation49_spill] sm:$0xff] }
 0x222   :  { %v4021_v54 = vadd.f32 %v3506_v46, %v3512_v12  ;;  %v4025_v28 = vadd.f32 %v3508_v18, %v3516_v17  ;;  %v4029_v2 = vadd.f32 %v3506_v46, %v3520_v25  ;;  %v4033_v39 = vadd.f32 %v3508_v18, %v3524_v13 }
 0x223   :  { %v4037_v57 = vadd.f32 %v3506_v46, %v3528_v37  ;;  %v4041_v12 = vadd.f32 %v3508_v18, %v3532_v26  ;;  %v4045_v17 = vadd.f32 %v3506_v46, %v3537_v10  ;;  %v4049_v25 = vadd.f32 %v3508_v18, %v5046_v63 }
 0x224   :  { %5043 = vst [vmem:[#allocation60_spill] sm:$0xff] %v4033_v39  ;;  %v4053_v13 = vadd.f32 %v3506_v46, %v5048_v40  ;;  %v5050_v39 = vld [vmem:[#allocation11_spill] sm:$0xff]  ;;  %v4069_v63 = vadd.f32 %v3506_v46, %v3561_v11 }
 0x225   :  { %5044 = vst [vmem:[#allocation62_spill] sm:$0xff] %v4037_v57  ;;  %5045 = vst [vmem:[#allocation64_spill] sm:$0xff] %v4041_v12  ;;  %v4057_v37 = vadd.f32 %v3508_v18, %v5050_v39  ;;  %v5052_v57 = vld [vmem:[#allocation12_spill] sm:$0xff]  ;;  %v5054_v12 = vld [vmem:[#allocation13_spill] sm:$0xff] }
 0x226   :  { %5047 = vst [vmem:[#allocation65_spill] sm:$0xff] %v4049_v25  ;;  %5049 = vst [vmem:[#allocation68_spill] sm:$0xff] %v4053_v13  ;;  %v4061_v26 = vadd.f32 %v3506_v46, %v5052_v57  ;;  %v4065_v10 = vadd.f32 %v3508_v18, %v5054_v12  ;;  %v5057_v25 = vld [vmem:[#allocation14_spill] sm:$0xff]  ;;  %v5058_v13 = vld [vmem:[#allocation15_spill] sm:$0xff] }
 0x227   :  { %5051 = vst [vmem:[#allocation70_spill] sm:$0xff] %v4057_v37  ;;  %5056 = vst [vmem:[#allocation76_spill] sm:$0xff] %v4069_v63  ;;  %v4073_v40 = vadd.f32 %v3508_v18, %v5057_v25  ;;  %v4077_v39 = vadd.f32 %v3506_v46, %v5058_v13  ;;  %v5060_v37 = vld [vmem:[#allocation16_spill] sm:$0xff]  ;;  %v5066_v63 = vld [vmem:[#allocation19_spill] sm:$0xff]  ;;  %v4097_v13 = vadd.f32 %v3508_v18, %v3589_v56 }
 0x228   :  { %5053 = vst [vmem:[#allocation72_spill] sm:$0xff] %v4061_v26  ;;  %5055 = vst [vmem:[#allocation73_spill] sm:$0xff] %v4065_v10  ;;  %v4081_v57 = vadd.f32 %v3508_v18, %v5060_v37  ;;  %v5062_v26 = vld [vmem:[#allocation17_spill] sm:$0xff]  ;;  %v5064_v10 = vld [vmem:[#allocation18_spill] sm:$0xff]  ;;  %v4093_v25 = vadd.f32 %v3506_v46, %v5066_v63 }
 0x229   :  { %5059 = vst [vmem:[#allocation78_spill] sm:$0xff] %v4077_v39  ;;  %v4085_v12 = vadd.f32 %v3506_v46, %v5062_v26  ;;  %v4089_v11 = vadd.f32 %v3508_v18, %v5064_v10  ;;  %5068 = vst [vmem:[#allocation88_spill] sm:$0xff] %v4097_v13  ;;  %v5069_v39 = vld [vmem:[#allocation20_spill] sm:$0xff]  ;;  %v5079_v13 = vld [vmem:[#allocation25_spill] sm:$0xff] }
 0x22a   :  { %5061 = vst [vmem:[#allocation80_spill] sm:$0xff] %v4081_v57  ;;  %5067 = vst [vmem:[#allocation86_spill] sm:$0xff] %v4093_v25  ;;  %v4101_v37 = vadd.f32 %v3506_v46, %v5069_v39  ;;  %v5071_v57 = vld [vmem:[#allocation21_spill] sm:$0xff]  ;;  %v5077_v25 = vld [vmem:[#allocation24_spill] sm:$0xff]  ;;  %v4121_v39 = vadd.f32 %v3508_v18, %v5079_v13 }
 0x22b   :  { %5063 = vst [vmem:[#allocation81_spill] sm:$0xff] %v4085_v12  ;;  %5065 = vst [vmem:[#allocation84_spill] sm:$0xff] %v4089_v11  ;;  %v4105_v26 = vadd.f32 %v3508_v18, %v5071_v57  ;;  %v5073_v12 = vld [vmem:[#allocation22_spill] sm:$0xff]  ;;  %v5075_v11 = vld [vmem:[#allocation23_spill] sm:$0xff]  ;;  %v4117_v56 = vadd.f32 %v3506_v46, %v5077_v25 }
 0x22c   :  { %5070 = vst [vmem:[#allocation89_spill] sm:$0xff] %v4101_v37  ;;  %v4109_v10 = vadd.f32 %v3506_v46, %v5073_v12  ;;  %v4113_v63 = vadd.f32 %v3508_v18, %v5075_v11  ;;  %5080 = vst [vmem:[#allocation100_spill] sm:$0xff] %v4121_v39  ;;  %v5081_v37 = vld [vmem:[#allocation26_spill] sm:$0xff]  ;;  %v5091_v39 = vld [vmem:[#allocation31_spill] sm:$0xff] }
 0x22d   :  { %5072 = vst [vmem:[#allocation92_spill] sm:$0xff] %v4105_v26  ;;  %5078 = vst [vmem:[#allocation97_spill] sm:$0xff] %v4117_v56  ;;  %v4125_v57 = vadd.f32 %v3506_v46, %v5081_v37  ;;  %v5083_v26 = vld [vmem:[#allocation27_spill] sm:$0xff]  ;;  %v5089_v56 = vld [vmem:[#allocation30_spill] sm:$0xff]  ;;  %v4145_v37 = vadd.f32 %v3508_v18, %v5091_v39 }
 0x22e   :  { %5074 = vst [vmem:[#allocation94_spill] sm:$0xff] %v4109_v10  ;;  %5076 = vst [vmem:[#allocation96_spill] sm:$0xff] %v4113_v63  ;;  %v4129_v12 = vadd.f32 %v3508_v18, %v5083_v26  ;;  %v5085_v10 = vld [vmem:[#allocation28_spill] sm:$0xff]  ;;  %v5087_v63 = vld [vmem:[#allocation29_spill] sm:$0xff]  ;;  %v4141_v13 = vadd.f32 %v3506_v46, %v5089_v56 }
 0x22f   :  { %5082 = vst [vmem:[#allocation102_spill] sm:$0xff] %v4125_v57  ;;  %v4133_v11 = vadd.f32 %v3506_v46, %v5085_v10  ;;  %v4137_v25 = vadd.f32 %v3508_v18, %v5087_v63  ;;  %5092 = vst [vmem:[#allocation12_spill] sm:$0xff] %v4145_v37  ;;  %v5093_v57 = vld [vmem:[#allocation32_spill] sm:$0xff]  ;;  %v5103_v37 = vld [vmem:[#allocation37_spill] sm:$0xff] }
 0x230   :  { %5084 = vst [vmem:[#allocation104_spill] sm:$0xff] %v4129_v12  ;;  %5090 = vst [vmem:[#allocation11_spill] sm:$0xff] %v4141_v13  ;;  %v4149_v26 = vadd.f32 %v3506_v46, %v5093_v57  ;;  %v5095_v12 = vld [vmem:[#allocation33_spill] sm:$0xff]  ;;  %v5101_v13 = vld [vmem:[#allocation36_spill] sm:$0xff]  ;;  %v4169_v57 = vadd.f32 %v3508_v18, %v5103_v37 }
 0x231   :  { %5086 = vst [vmem:[#allocation105_spill] sm:$0xff] %v4133_v11  ;;  %5088 = vst [vmem:[#allocation49_spill] sm:$0xff] %v4137_v25  ;;  %v4153_v10 = vadd.f32 %v3508_v18, %v5095_v12  ;;  %v5097_v11 = vld [vmem:[#allocation34_spill] sm:$0xff]  ;;  %v5099_v25 = vld [vmem:[#allocation35_spill] sm:$0xff]  ;;  %v4165_v39 = vadd.f32 %v3506_v46, %v5101_v13 }
 0x232   :  { %5094 = vst [vmem:[#allocation13_spill] sm:$0xff] %v4149_v26  ;;  %v4157_v63 = vadd.f32 %v3506_v46, %v5097_v11  ;;  %v4161_v56 = vadd.f32 %v3508_v18, %v5099_v25  ;;  %5104 = vst [vmem:[#allocation18_spill] sm:$0xff] %v4169_v57  ;;  %v5105_v26 = vld [vmem:[#allocation38_spill] sm:$0xff]  ;;  %v5115_v57 = vld [vmem:[#allocation43_spill] sm:$0xff] }
 0x233   :  { %5096 = vst [vmem:[#allocation14_spill] sm:$0xff] %v4153_v10  ;;  %5102 = vst [vmem:[#allocation17_spill] sm:$0xff] %v4165_v39  ;;  %v4173_v12 = vadd.f32 %v3506_v46, %v5105_v26  ;;  %v5107_v10 = vld [vmem:[#allocation39_spill] sm:$0xff]  ;;  %v5113_v39 = vld [vmem:[#allocation42_spill] sm:$0xff]  ;;  %v4193_v26 = vadd.f32 %v3508_v18, %v5115_v57 }
 0x234   :  { %5098 = vst [vmem:[#allocation15_spill] sm:$0xff] %v4157_v63  ;;  %5100 = vst [vmem:[#allocation16_spill] sm:$0xff] %v4161_v56  ;;  %v4177_v11 = vadd.f32 %v3508_v18, %v5107_v10  ;;  %v5109_v63 = vld [vmem:[#allocation40_spill] sm:$0xff]  ;;  %v5111_v56 = vld [vmem:[#allocation41_spill] sm:$0xff]  ;;  %v4189_v37 = vadd.f32 %v3506_v46, %v5113_v39 }
 0x235   :  { %5106 = vst [vmem:[#allocation19_spill] sm:$0xff] %v4173_v12  ;;  %v4181_v25 = vadd.f32 %v3506_v46, %v5109_v63  ;;  %v4185_v13 = vadd.f32 %v3508_v18, %v5111_v56  ;;  %5116 = vst [vmem:[#allocation24_spill] sm:$0xff] %v4193_v26  ;;  %v5117_v12 = vld [vmem:[#allocation44_spill] sm:$0xff]  ;;  %v5124_v26 = vld [vmem:[#allocation53_spill] sm:$0xff] }
 0x236   :  { %5108 = vst [vmem:[#allocation20_spill] sm:$0xff] %v4177_v11  ;;  %5114 = vst [vmem:[#allocation23_spill] sm:$0xff] %v4189_v37  ;;  %v4197_v10 = vadd.f32 %v3506_v46, %v5117_v12  ;;  %v5119_v11 = vld [vmem:[#allocation45_spill] sm:$0xff]  ;;  %v5123_v37 = vld [vmem:[#allocation51_spill] sm:$0xff]  ;;  %v4217_v12 = vadd.f32 %v3508_v18, %v5124_v26  ;;  %v4237_v26 = vadd.f32 %v3506_v46, %v3729_v50 }
 0x237   :  { %5110 = vst [vmem:[#allocation21_spill] sm:$0xff] %v4181_v25  ;;  %5112 = vst [vmem:[#allocation22_spill] sm:$0xff] %v4185_v13  ;;  %v4201_v63 = vadd.f32 %v3508_v18, %v5119_v11  ;;  %v5121_v25 = vld [vmem:[#allocation46_spill] sm:$0xff]  ;;  %v4213_v57 = vadd.f32 %v3506_v46, %v5123_v37  ;;  %v4233_v37 = vadd.f32 %v3508_v18, %v3725_v9 }
 0x238   :  { %5118 = vst [vmem:[#allocation25_spill] sm:$0xff] %v4197_v10  ;;  %v4205_v56 = vadd.f32 %v3506_v46, %v5121_v25  ;;  %v5122_v13 = vld [vmem:[#allocation50_spill] sm:$0xff]  ;;  %v5125_v10 = vld [vmem:[#allocation55_spill] sm:$0xff]  ;;  %v4253_v9 = vadd.f32 %v3506_v46, %v3745_v8  ;;  %v4257_v50 = vadd.f32 %v3508_v18, %v3749_v61  ;;  %v4273_v8 = vadd.f32 %v3508_v18, %v3765_v20 }
 0x239   :  { %5120 = vst [vmem:[#allocation26_spill] sm:$0xff] %v4201_v63  ;;  %v4209_v39 = vadd.f32 %v3508_v18, %v5122_v13  ;;  %v4221_v11 = vadd.f32 %v3506_v46, %v5125_v10  ;;  %v5126_v63 = vld [vmem:[#allocation58_spill] sm:$0xff]  ;;  %v4229_v13 = vadd.f32 %v3506_v46, %v3721_v5  ;;  %v4241_v10 = vadd.f32 %v3508_v18, %v3733_v48 }
 0x23a   :  { %v4225_v25 = vadd.f32 %v3508_v18, %v5126_v63  ;;  %v4245_v63 = vadd.f32 %v3506_v46, %v3737_v41  ;;  %v4249_v5 = vadd.f32 %v3508_v18, %v3741_v19  ;;  %v4261_v48 = vadd.f32 %v3506_v46, %v3753_v1 }
 0x23b   :  { %v4265_v41 = vadd.f32 %v3508_v18, %v3757_v16  ;;  %v4269_v19 = vadd.f32 %v3506_v46, %v3761_v21  ;;  %v4277_v61 = vadd.f32 %v3506_v46, %v3769_v22  ;;  %v4281_v1 = vadd.f32 %v3508_v18, %v3773_v27 }
 0x23c   :  { %v4285_v16 = vadd.f32 %v3506_v46, %v3777_v31  ;;  %v4289_v21 = vadd.f32 %v3508_v18, %v3781_v38  ;;  %v4293_v20 = vadd.f32 %v3506_v46, %v3785_v42  ;;  %v4297_v22 = vadd.f32 %v3508_v18, %v3789_v47 }
 0x23d   :  { %v4301_v27 = vadd.f32 %v3506_v46, %v3793_v51  ;;  %v4305_v31 = vadd.f32 %v3508_v18, %v3797_v58  ;;  %v4309_v38 = vadd.f32 %v3506_v46, %v3801_v62  ;;  %v4313_v42 = vadd.f32 %v3508_v18, %v3805_v3 }
 0x23e   :  { %v4317_v47 = vadd.f32 %v3506_v46, %v3809_v7  ;;  %v4321_v51 = vadd.f32 %v3508_v18, %v3813_v14  ;;  %v4325_v58 = vadd.f32 %v3506_v46, %v3817_v23  ;;  %v4329_v62 = vadd.f32 %v3508_v18, %v3821_v30 }
 0x23f   :  { %v4333_v3 = vadd.f32 %v3506_v46, %v3825_v36  ;;  %v4337_v7 = vadd.f32 %v3508_v18, %v3829_v49  ;;  %v4341_v14 = vadd.f32 %v3506_v46, %v3833_v55  ;;  %v4345_v23 = vadd.f32 %v3508_v18, %v3837_v0 }
 0x240   :  { %v4349_v30 = vadd.f32 %v3506_v46, %v3841_v6  ;;  %v4353_v36 = vadd.f32 %v3508_v18, %v3845_v24  ;;  %v4357_v49 = vadd.f32 %v3506_v46, %v3849_v33  ;;  %v4361_v55 = vadd.f32 %v3508_v18, %v3853_v45 }
 0x241   :  { %5127 = vst [vmem:[#allocation27_spill] sm:$0xff] %v4341_v14  ;;  %5128 = vst [vmem:[#allocation28_spill] sm:$0xff] %v4345_v23  ;;  %v5133_v14 = vld [vmem:[#allocation59_spill] sm:$0xff]  ;;  %v5135_v23 = vld [vmem:[#allocation61_spill] sm:$0xff] }
 0x242   :  { %5129 = vst [vmem:[#allocation29_spill] sm:$0xff] %v4349_v30  ;;  %5130 = vst [vmem:[#allocation30_spill] sm:$0xff] %v4353_v36  ;;  %v4365_v0 = vadd.f32 %v3506_v46, %v5133_v14  ;;  %v4369_v6 = vadd.f32 %v3508_v18, %v5135_v23  ;;  %v5137_v30 = vld [vmem:[#allocation63_spill] sm:$0xff]  ;;  %v5139_v36 = vld [vmem:[#allocation66_spill] sm:$0xff] }
 0x243   :  { %5131 = vst [vmem:[#allocation31_spill] sm:$0xff] %v4357_v49  ;;  %5132 = vst [vmem:[#allocation32_spill] sm:$0xff] %v4361_v55  ;;  %v4373_v24 = vadd.f32 %v3506_v46, %v5137_v30  ;;  %v4377_v33 = vadd.f32 %v3508_v18, %v5139_v36  ;;  %v5141_v49 = vld [vmem:[#allocation67_spill] sm:$0xff]  ;;  %v5143_v55 = vld [vmem:[#allocation69_spill] sm:$0xff] }
 0x244   :  { %5134 = vst [vmem:[#allocation33_spill] sm:$0xff] %v4365_v0  ;;  %5136 = vst [vmem:[#allocation34_spill] sm:$0xff] %v4369_v6  ;;  %v4381_v45 = vadd.f32 %v3506_v46, %v5141_v49  ;;  %v4385_v14 = vadd.f32 %v3508_v18, %v5143_v55  ;;  %v5145_v0 = vld [vmem:[#allocation71_spill] sm:$0xff]  ;;  %v5147_v6 = vld [vmem:[#allocation74_spill] sm:$0xff] }
 0x245   :  { %5138 = vst [vmem:[#allocation35_spill] sm:$0xff] %v4373_v24  ;;  %5140 = vst [vmem:[#allocation36_spill] sm:$0xff] %v4377_v33  ;;  %v4389_v23 = vadd.f32 %v3506_v46, %v5145_v0  ;;  %v4393_v30 = vadd.f32 %v3508_v18, %v5147_v6  ;;  %v5149_v24 = vld [vmem:[#allocation75_spill] sm:$0xff]  ;;  %v5151_v33 = vld [vmem:[#allocation77_spill] sm:$0xff] }
 0x246   :  { %5142 = vst [vmem:[#allocation37_spill] sm:$0xff] %v4381_v45  ;;  %5144 = vst [vmem:[#allocation38_spill] sm:$0xff] %v4385_v14  ;;  %v4397_v36 = vadd.f32 %v3506_v46, %v5149_v24  ;;  %v4401_v49 = vadd.f32 %v3508_v18, %v5151_v33  ;;  %v5153_v45 = vld [vmem:[#allocation79_spill] sm:$0xff]  ;;  %v5155_v14 = vld [vmem:[#allocation82_spill] sm:$0xff] }
 0x247   :  { %5146 = vst [vmem:[#allocation39_spill] sm:$0xff] %v4389_v23  ;;  %5148 = vst [vmem:[#allocation40_spill] sm:$0xff] %v4393_v30  ;;  %v4405_v55 = vadd.f32 %v3506_v46, %v5153_v45  ;;  %v4409_v0 = vadd.f32 %v3508_v18, %v5155_v14  ;;  %v5157_v23 = vld [vmem:[#allocation83_spill] sm:$0xff]  ;;  %v5159_v30 = vld [vmem:[#allocation85_spill] sm:$0xff] }
 0x248   :  { %5150 = vst [vmem:[#allocation41_spill] sm:$0xff] %v4397_v36  ;;  %5152 = vst [vmem:[#allocation42_spill] sm:$0xff] %v4401_v49  ;;  %v4413_v6 = vadd.f32 %v3506_v46, %v5157_v23  ;;  %v4417_v24 = vadd.f32 %v3508_v18, %v5159_v30  ;;  %v5161_v36 = vld [vmem:[#allocation87_spill] sm:$0xff]  ;;  %v5163_v49 = vld [vmem:[#allocation90_spill] sm:$0xff] }
 0x249   :  { %5154 = vst [vmem:[#allocation43_spill] sm:$0xff] %v4405_v55  ;;  %5156 = vst [vmem:[#allocation44_spill] sm:$0xff] %v4409_v0  ;;  %v4421_v33 = vadd.f32 %v3506_v46, %v5161_v36  ;;  %v4425_v45 = vadd.f32 %v3508_v18, %v5163_v49  ;;  %v5165_v55 = vld [vmem:[#allocation91_spill] sm:$0xff]  ;;  %v5167_v0 = vld [vmem:[#allocation93_spill] sm:$0xff] }
 0x24a   :  { %5158 = vst [vmem:[#allocation45_spill] sm:$0xff] %v4413_v6  ;;  %5160 = vst [vmem:[#allocation46_spill] sm:$0xff] %v4417_v24  ;;  %v4429_v14 = vadd.f32 %v3506_v46, %v5165_v55  ;;  %v4433_v23 = vadd.f32 %v3508_v18, %v5167_v0  ;;  %v5169_v6 = vld [vmem:[#allocation95_spill] sm:$0xff]  ;;  %v5171_v24 = vld [vmem:[#allocation98_spill] sm:$0xff] }
 0x24b   :  { %5162 = vst [vmem:[#allocation50_spill] sm:$0xff] %v4421_v33  ;;  %5164 = vst [vmem:[#allocation51_spill] sm:$0xff] %v4425_v45  ;;  %v4437_v30 = vadd.f32 %v3506_v46, %v5169_v6  ;;  %v4441_v36 = vadd.f32 %v3508_v18, %v5171_v24  ;;  %v5173_v33 = vld [vmem:[#allocation99_spill] sm:$0xff]  ;;  %v5175_v45 = vld [vmem:[#allocation101_spill] sm:$0xff] }
 0x24c   :  { %5166 = vst [vmem:[#allocation53_spill] sm:$0xff] %v4429_v14  ;;  %5168 = vst [vmem:[#allocation55_spill] sm:$0xff] %v4433_v23  ;;  %v4445_v49 = vadd.f32 %v3506_v46, %v5173_v33  ;;  %v4449_v55 = vadd.f32 %v3508_v18, %v5175_v45  ;;  %v5177_v14 = vld [vmem:[#allocation103_spill] sm:$0xff] }
 0x24d   :  { %5170 = vst [vmem:[#allocation58_spill] sm:$0xff] %v4437_v30  ;;  %5172 = vst [vmem:[#allocation59_spill] sm:$0xff] %v4441_v36  ;;  %v4453_v0 = vadd.f32 %v3506_v46, %v5177_v14  ;;  %v5179_v23 = vld [vmem:[#allocation47_spill] sm:$0xff]  ;;  %v5180_v30 = vld [vmem:[#allocation48_spill] sm:$0xff] }
 0x24e   :  { %5174 = vst [vmem:[#allocation61_spill] sm:$0xff] %v4445_v49  ;;  %5176 = vst [vmem:[#allocation63_spill] sm:$0xff] %v4449_v55  ;;  %v4457_v6 = vadd.f32 %v3508_v18, %v5179_v23  ;;  %v4461_v24 = vadd.f32 %v3506_v46, %v5180_v30  ;;  %v5181_v36 = vld [vmem:[#allocation52_spill] sm:$0xff]  ;;  %v5182_v49 = vld [vmem:[#allocation54_spill] sm:$0xff]  ;;  %v4481_v30 = vadd.f32 %v3508_v18, %v3973_v60 }
 0x24f   :  { %5178 = vst [vmem:[#allocation66_spill] sm:$0xff] %v4453_v0  ;;  %v4465_v33 = vadd.f32 %v3508_v18, %v5181_v36  ;;  %v4469_v45 = vadd.f32 %v3506_v46, %v5182_v49  ;;  %v5183_v55 = vld [vmem:[#allocation56_spill] sm:$0xff]  ;;  %v5184_v0 = vld [vmem:[#allocation57_spill] sm:$0xff]  ;;  %v4485_v36 = vadd.f32 %v3506_v46, %v3977_v53  ;;  %v4489_v49 = vadd.f32 %v3508_v18, %v3981_v29 }
 0x250   :  { %v4473_v14 = vadd.f32 %v3508_v18, %v5183_v55  ;;  %v4477_v23 = vadd.f32 %v3506_v46, %v5184_v0  ;;  %5186 = vst [vmem:[#allocation69_spill] sm:$0xff] %v4481_v30  ;;  %v4493_v55 = vadd.f32 %v3506_v46, %v3985_v44  ;;  %v4497_v0 = vadd.f32 %v3508_v18, %v3989_v59 }
 0x251   :  { %5187 = vst [vmem:[#allocation71_spill] sm:$0xff] %v4485_v36  ;;  %5188 = vst [vmem:[#allocation74_spill] sm:$0xff] %v4489_v49  ;;  %v4501_v60 = vadd.f32 %v3506_v46, %v3993_v15  ;;  %v1946_v30 = vmax.f32 %v3997_v35, 0.0  ;;  %v1947_v53 = vmax.f32 %v4001_v4, 0.0  ;;  %v1948_v36 = vmax.f32 %v4005_v32, 0.0  ;;  %v5192_v46 = vld [vmem:[#allocation60_spill] sm:$0xff] }
 0x252   :  { %5185 = vst [vmem:[#allocation67_spill] sm:$0xff] %v4477_v23  ;;  %5189 = vst [vmem:[#allocation75_spill] sm:$0xff] %v4493_v55  ;;  %v1949_v29 = vmax.f32 %v4009_v52, 0.0  ;;  %v1950_v49 = vmax.f32 %v4013_v43, 0.0  ;;  %v1951_v44 = vmax.f32 %v4017_v34, 0.0  ;;  %v1952_v55 = vmax.f32 %v4021_v54, 0.0 }
 0x253   :  { %5190 = vst [vmem:[#allocation77_spill] sm:$0xff] %v4497_v0  ;;  %5191 = vst [vmem:[#allocation79_spill] sm:$0xff] %v4501_v60  ;;  %v1953_v18 = vmax.f32 %v4025_v28, 0.0  ;;  %v1954_v59 = vmax.f32 %v4029_v2, 0.0  ;;  %v1955_v15 = vmax.f32 %v5192_v46, 0.0  ;;  %v5193_v60 = vld [vmem:[#allocation62_spill] sm:$0xff] }
 0x254   :  { %v1956_v35 = vmax.f32 %v5193_v60, 0.0  ;;  %v5194_v0 = vld [vmem:[#allocation64_spill] sm:$0xff]  ;;  %2074 = vst [vmem:[#allocation2] sm:$0xff] %v1946_v30  ;;  %2075 = vst [vmem:[#allocation2 + $0x8] sm:$0xff] %v1947_v53  ;;  %v1958_v32 = vmax.f32 %v4045_v17, 0.0  ;;  %v5195_v52 = vld [vmem:[#allocation65_spill] sm:$0xff] }
 0x255   :  { %v1957_v4 = vmax.f32 %v5194_v0, 0.0  ;;  %2076 = vst [vmem:[#allocation2 + $0x10] sm:$0xff] %v1948_v36  ;;  %2077 = vst [vmem:[#allocation2 + $0x18] sm:$0xff] %v1949_v29  ;;  %v1959_v43 = vmax.f32 %v5195_v52, 0.0  ;;  %v5196_v34 = vld [vmem:[#allocation68_spill] sm:$0xff]  ;;  %v5197_v23 = vld [vmem:[#allocation70_spill] sm:$0xff] }
 0x256   :  { %v1960_v54 = vmax.f32 %v5196_v34, 0.0  ;;  %v1961_v28 = vmax.f32 %v5197_v23, 0.0  ;;  %2078 = vst [vmem:[#allocation2 + $0x20] sm:$0xff] %v1950_v49  ;;  %2079 = vst [vmem:[#allocation2 + $0x28] sm:$0xff] %v1951_v44  ;;  %v5198_v2 = vld [vmem:[#allocation72_spill] sm:$0xff]  ;;  %v5199_v46 = vld [vmem:[#allocation73_spill] sm:$0xff] }
 0x257   :  { %2080 = vst [vmem:[#allocation2 + $0x30] sm:$0xff] %v1952_v55  ;;  %2081 = vst [vmem:[#allocation2 + $0x38] sm:$0xff] %v1953_v18  ;;  %v1962_v60 = vmax.f32 %v5198_v2, 0.0  ;;  %v1963_v0 = vmax.f32 %v5199_v46, 0.0  ;;  %v5200_v30 = vld [vmem:[#allocation76_spill] sm:$0xff]  ;;  %v1965_v36 = vmax.f32 %v4073_v40, 0.0 }
 0x258   :  { %v1964_v53 = vmax.f32 %v5200_v30, 0.0  ;;  %2082 = vst [vmem:[#allocation2 + $0x40] sm:$0xff] %v1954_v59  ;;  %2083 = vst [vmem:[#allocation2 + $0x48] sm:$0xff] %v1955_v15  ;;  %v5201_v17 = vld [vmem:[#allocation78_spill] sm:$0xff]  ;;  %v5202_v52 = vld [vmem:[#allocation80_spill] sm:$0xff] }
 0x259   :  { %2084 = vst [vmem:[#allocation2 + $0x50] sm:$0xff] %v1956_v35  ;;  %2085 = vst [vmem:[#allocation2 + $0x58] sm:$0xff] %v1957_v4  ;;  %v1966_v29 = vmax.f32 %v5201_v17, 0.0  ;;  %v1967_v23 = vmax.f32 %v5202_v52, 0.0  ;;  %v5203_v49 = vld [vmem:[#allocation81_spill] sm:$0xff]  ;;  %v5204_v55 = vld [vmem:[#allocation84_spill] sm:$0xff] }
 0x25a   :  { %v1968_v44 = vmax.f32 %v5203_v49, 0.0  ;;  %v1969_v18 = vmax.f32 %v5204_v55, 0.0  ;;  %2086 = vst [vmem:[#allocation2 + $0x60] sm:$0xff] %v1958_v32  ;;  %2087 = vst [vmem:[#allocation2 + $0x68] sm:$0xff] %v1959_v43  ;;  %v5205_v34 = vld [vmem:[#allocation86_spill] sm:$0xff]  ;;  %v5206_v46 = vld [vmem:[#allocation88_spill] sm:$0xff] }
 0x25b   :  { %2088 = vst [vmem:[#allocation2 + $0x70] sm:$0xff] %v1960_v54  ;;  %2089 = vst [vmem:[#allocation2 + $0x78] sm:$0xff] %v1961_v28  ;;  %v1970_v2 = vmax.f32 %v5205_v34, 0.0  ;;  %v1971_v40 = vmax.f32 %v5206_v46, 0.0  ;;  %v5207_v59 = vld [vmem:[#allocation89_spill] sm:$0xff]  ;;  %v5208_v35 = vld [vmem:[#allocation92_spill] sm:$0xff] }
 0x25c   :  { %v1972_v15 = vmax.f32 %v5207_v59, 0.0  ;;  %v1973_v4 = vmax.f32 %v5208_v35, 0.0  ;;  %2090 = vst [vmem:[#allocation2 + $0x80] sm:$0xff] %v1962_v60  ;;  %2091 = vst [vmem:[#allocation2 + $0x88] sm:$0xff] %v1963_v0  ;;  %v5209_v30 = vld [vmem:[#allocation94_spill] sm:$0xff]  ;;  %v5210_v52 = vld [vmem:[#allocation96_spill] sm:$0xff] }
 0x25d   :  { %2092 = vst [vmem:[#allocation2 + $0x90] sm:$0xff] %v1964_v53  ;;  %2093 = vst [vmem:[#allocation2 + $0x98] sm:$0xff] %v1965_v36  ;;  %v1974_v17 = vmax.f32 %v5209_v30, 0.0  ;;  %v1975_v49 = vmax.f32 %v5210_v52, 0.0  ;;  %v5211_v32 = vld [vmem:[#allocation97_spill] sm:$0xff]  ;;  %v5212_v54 = vld [vmem:[#allocation100_spill] sm:$0xff] }
 0x25e   :  { %v1976_v43 = vmax.f32 %v5211_v32, 0.0  ;;  %v1977_v28 = vmax.f32 %v5212_v54, 0.0  ;;  %2094 = vst [vmem:[#allocation2 + $0xa0] sm:$0xff] %v1966_v29  ;;  %2095 = vst [vmem:[#allocation2 + $0xa8] sm:$0xff] %v1967_v23  ;;  %v5213_v55 = vld [vmem:[#allocation102_spill] sm:$0xff]  ;;  %v5214_v46 = vld [vmem:[#allocation104_spill] sm:$0xff] }
 0x25f   :  { %2096 = vst [vmem:[#allocation2 + $0xb0] sm:$0xff] %v1968_v44  ;;  %2097 = vst [vmem:[#allocation2 + $0xb8] sm:$0xff] %v1969_v18  ;;  %v1978_v34 = vmax.f32 %v5213_v55, 0.0  ;;  %v1979_v59 = vmax.f32 %v5214_v46, 0.0  ;;  %v5215_v60 = vld [vmem:[#allocation105_spill] sm:$0xff]  ;;  %v5217_v35 = vld [vmem:[#allocation11_spill] sm:$0xff] }
 0x260   :  { %v1980_v0 = vmax.f32 %v5215_v60, 0.0  ;;  %v5216_v53 = vld [vmem:[#allocation49_spill] sm:$0xff]  ;;  %2098 = vst [vmem:[#allocation2 + $0xc0] sm:$0xff] %v1970_v2  ;;  %2099 = vst [vmem:[#allocation2 + $0xc8] sm:$0xff] %v1971_v40  ;;  %v1982_v30 = vmax.f32 %v5217_v35, 0.0  ;;  %v5218_v52 = vld [vmem:[#allocation12_spill] sm:$0xff] }
 0x261   :  { %v1981_v36 = vmax.f32 %v5216_v53, 0.0  ;;  %2100 = vst [vmem:[#allocation2 + $0xd0] sm:$0xff] %v1972_v15  ;;  %2101 = vst [vmem:[#allocation2 + $0xd8] sm:$0xff] %v1973_v4  ;;  %v1983_v32 = vmax.f32 %v5218_v52, 0.0  ;;  %v5219_v29 = vld [vmem:[#allocation13_spill] sm:$0xff]  ;;  %v5220_v44 = vld [vmem:[#allocation14_spill] sm:$0xff] }
 0x262   :  { %v1984_v23 = vmax.f32 %v5219_v29, 0.0  ;;  %v1985_v18 = vmax.f32 %v5220_v44, 0.0  ;;  %2102 = vst [vmem:[#allocation2 + $0xe0] sm:$0xff] %v1974_v17  ;;  %2103 = vst [vmem:[#allocation2 + $0xe8] sm:$0xff] %v1975_v49  ;;  %v5221_v54 = vld [vmem:[#allocation15_spill] sm:$0xff]  ;;  %v5222_v46 = vld [vmem:[#allocation16_spill] sm:$0xff] }
 0x263   :  { %2104 = vst [vmem:[#allocation2 + $0xf0] sm:$0xff] %v1976_v43  ;;  %2105 = vst [vmem:[#allocation2 + $0xf8] sm:$0xff] %v1977_v28  ;;  %v1986_v55 = vmax.f32 %v5221_v54, 0.0  ;;  %v1987_v60 = vmax.f32 %v5222_v46, 0.0  ;;  %v5223_v2 = vld [vmem:[#allocation17_spill] sm:$0xff]  ;;  %v5224_v15 = vld [vmem:[#allocation18_spill] sm:$0xff] }
 0x264   :  { %v1988_v40 = vmax.f32 %v5223_v2, 0.0  ;;  %v1989_v4 = vmax.f32 %v5224_v15, 0.0  ;;  %2106 = vst [vmem:[#allocation2 + $0x100] sm:$0xff] %v1978_v34  ;;  %2107 = vst [vmem:[#allocation2 + $0x108] sm:$0xff] %v1979_v59  ;;  %v5225_v53 = vld [vmem:[#allocation19_spill] sm:$0xff]  ;;  %v5226_v52 = vld [vmem:[#allocation20_spill] sm:$0xff] }
 0x265   :  { %2108 = vst [vmem:[#allocation2 + $0x110] sm:$0xff] %v1980_v0  ;;  %2109 = vst [vmem:[#allocation2 + $0x118] sm:$0xff] %v1981_v36  ;;  %v1990_v35 = vmax.f32 %v5225_v53, 0.0  ;;  %v1991_v29 = vmax.f32 %v5226_v52, 0.0  ;;  %v5227_v17 = vld [vmem:[#allocation21_spill] sm:$0xff]  ;;  %v5228_v43 = vld [vmem:[#allocation22_spill] sm:$0xff] }
 0x266   :  { %v1992_v49 = vmax.f32 %v5227_v17, 0.0  ;;  %v1993_v28 = vmax.f32 %v5228_v43, 0.0  ;;  %2110 = vst [vmem:[#allocation2 + $0x120] sm:$0xff] %v1982_v30  ;;  %2111 = vst [vmem:[#allocation2 + $0x128] sm:$0xff] %v1983_v32  ;;  %v5229_v44 = vld [vmem:[#allocation23_spill] sm:$0xff]  ;;  %v5230_v46 = vld [vmem:[#allocation24_spill] sm:$0xff] }
 0x267   :  { %2112 = vst [vmem:[#allocation2 + $0x130] sm:$0xff] %v1984_v23  ;;  %2113 = vst [vmem:[#allocation2 + $0x138] sm:$0xff] %v1985_v18  ;;  %v1994_v54 = vmax.f32 %v5229_v44, 0.0  ;;  %v1995_v2 = vmax.f32 %v5230_v46, 0.0  ;;  %v5231_v34 = vld [vmem:[#allocation25_spill] sm:$0xff]  ;;  %v5232_v0 = vld [vmem:[#allocation26_spill] sm:$0xff] }
 0x268   :  { %v1996_v59 = vmax.f32 %v5231_v34, 0.0  ;;  %v1997_v36 = vmax.f32 %v5232_v0, 0.0  ;;  %2114 = vst [vmem:[#allocation2 + $0x140] sm:$0xff] %v1986_v55  ;;  %2115 = vst [vmem:[#allocation2 + $0x148] sm:$0xff] %v1987_v60  ;;  %v1998_v15 = vmax.f32 %v4205_v56, 0.0  ;;  %v1999_v53 = vmax.f32 %v4209_v39, 0.0 }
 0x269   :  { %2116 = vst [vmem:[#allocation2 + $0x150] sm:$0xff] %v1988_v40  ;;  %2117 = vst [vmem:[#allocation2 + $0x158] sm:$0xff] %v1989_v4  ;;  %v2000_v30 = vmax.f32 %v4213_v57, 0.0  ;;  %v2001_v32 = vmax.f32 %v4217_v12, 0.0  ;;  %v2002_v23 = vmax.f32 %v4221_v11, 0.0  ;;  %v2003_v18 = vmax.f32 %v4225_v25, 0.0 }
 0x26a   :  { %2118 = vst [vmem:[#allocation2 + $0x160] sm:$0xff] %v1990_v35  ;;  %2119 = vst [vmem:[#allocation2 + $0x168] sm:$0xff] %v1991_v29  ;;  %v2004_v55 = vmax.f32 %v4229_v13, 0.0  ;;  %v2005_v60 = vmax.f32 %v4233_v37, 0.0  ;;  %v2006_v56 = vmax.f32 %v4237_v26, 0.0  ;;  %v2007_v39 = vmax.f32 %v4241_v10, 0.0 }
 0x26b   :  { %2120 = vst [vmem:[#allocation2 + $0x170] sm:$0xff] %v1992_v49  ;;  %2121 = vst [vmem:[#allocation2 + $0x178] sm:$0xff] %v1993_v28  ;;  %v2008_v57 = vmax.f32 %v4245_v63, 0.0  ;;  %v2009_v12 = vmax.f32 %v4249_v5, 0.0  ;;  %v2010_v11 = vmax.f32 %v4253_v9, 0.0  ;;  %v2011_v25 = vmax.f32 %v4257_v50, 0.0 }
 0x26c   :  { %2122 = vst [vmem:[#allocation2 + $0x180] sm:$0xff] %v1994_v54  ;;  %2123 = vst [vmem:[#allocation2 + $0x188] sm:$0xff] %v1995_v2  ;;  %v2012_v13 = vmax.f32 %v4261_v48, 0.0  ;;  %v2013_v37 = vmax.f32 %v4265_v41, 0.0  ;;  %v2014_v26 = vmax.f32 %v4269_v19, 0.0  ;;  %v2015_v10 = vmax.f32 %v4273_v8, 0.0 }
 0x26d   :  { %2124 = vst [vmem:[#allocation2 + $0x190] sm:$0xff] %v1996_v59  ;;  %2125 = vst [vmem:[#allocation2 + $0x198] sm:$0xff] %v1997_v36  ;;  %v2016_v63 = vmax.f32 %v4277_v61, 0.0  ;;  %v2017_v5 = vmax.f32 %v4281_v1, 0.0  ;;  %v2018_v9 = vmax.f32 %v4285_v16, 0.0  ;;  %v2019_v50 = vmax.f32 %v4289_v21, 0.0 }
 0x26e   :  { %2126 = vst [vmem:[#allocation2 + $0x1a0] sm:$0xff] %v1998_v15  ;;  %2127 = vst [vmem:[#allocation2 + $0x1a8] sm:$0xff] %v1999_v53  ;;  %v2020_v48 = vmax.f32 %v4293_v20, 0.0  ;;  %v2021_v41 = vmax.f32 %v4297_v22, 0.0  ;;  %v2022_v19 = vmax.f32 %v4301_v27, 0.0  ;;  %v2023_v8 = vmax.f32 %v4305_v31, 0.0 }
 0x26f   :  { %2128 = vst [vmem:[#allocation2 + $0x1b0] sm:$0xff] %v2000_v30  ;;  %2129 = vst [vmem:[#allocation2 + $0x1b8] sm:$0xff] %v2001_v32  ;;  %v2024_v61 = vmax.f32 %v4309_v38, 0.0  ;;  %v2025_v1 = vmax.f32 %v4313_v42, 0.0  ;;  %v2026_v16 = vmax.f32 %v4317_v47, 0.0  ;;  %v2027_v21 = vmax.f32 %v4321_v51, 0.0 }
 0x270   :  { %2130 = vst [vmem:[#allocation2 + $0x1c0] sm:$0xff] %v2002_v23  ;;  %2131 = vst [vmem:[#allocation2 + $0x1c8] sm:$0xff] %v2003_v18  ;;  %v2028_v20 = vmax.f32 %v4325_v58, 0.0  ;;  %v2029_v22 = vmax.f32 %v4329_v62, 0.0  ;;  %v2030_v27 = vmax.f32 %v4333_v3, 0.0  ;;  %v2031_v31 = vmax.f32 %v4337_v7, 0.0 }
 0x271   :  { %2132 = vst [vmem:[#allocation2 + $0x1d0] sm:$0xff] %v2004_v55  ;;  %2133 = vst [vmem:[#allocation2 + $0x1d8] sm:$0xff] %v2005_v60  ;;  %v5233_v38 = vld [vmem:[#allocation27_spill] sm:$0xff]  ;;  %v5234_v40 = vld [vmem:[#allocation28_spill] sm:$0xff] }
 0x272   :  { %2134 = vst [vmem:[#allocation2 + $0x1e0] sm:$0xff] %v2006_v56  ;;  %2135 = vst [vmem:[#allocation2 + $0x1e8] sm:$0xff] %v2007_v39  ;;  %v2032_v42 = vmax.f32 %v5233_v38, 0.0  ;;  %v2033_v4 = vmax.f32 %v5234_v40, 0.0  ;;  %v5235_v47 = vld [vmem:[#allocation29_spill] sm:$0xff]  ;;  %v5236_v58 = vld [vmem:[#allocation30_spill] sm:$0xff] }
 0x273   :  { %2136 = vst [vmem:[#allocation2 + $0x1f0] sm:$0xff] %v2008_v57  ;;  %2137 = vst [vmem:[#allocation2 + $0x1f8] sm:$0xff] %v2009_v12  ;;  %v2034_v51 = vmax.f32 %v5235_v47, 0.0  ;;  %v2035_v62 = vmax.f32 %v5236_v58, 0.0  ;;  %v5237_v35 = vld [vmem:[#allocation31_spill] sm:$0xff]  ;;  %v5238_v29 = vld [vmem:[#allocation32_spill] sm:$0xff] }
 0x274   :  { %2138 = vst [vmem:[#allocation2 + $0x200] sm:$0xff] %v2010_v11  ;;  %2139 = vst [vmem:[#allocation2 + $0x208] sm:$0xff] %v2011_v25  ;;  %v2036_v52 = vmax.f32 %v5237_v35, 0.0  ;;  %v2037_v17 = vmax.f32 %v5238_v29, 0.0  ;;  %v5239_v3 = vld [vmem:[#allocation33_spill] sm:$0xff]  ;;  %v5240_v49 = vld [vmem:[#allocation34_spill] sm:$0xff] }
 0x275   :  { %2140 = vst [vmem:[#allocation2 + $0x210] sm:$0xff] %v2012_v13  ;;  %2141 = vst [vmem:[#allocation2 + $0x218] sm:$0xff] %v2013_v37  ;;  %v2038_v7 = vmax.f32 %v5239_v3, 0.0  ;;  %v2039_v43 = vmax.f32 %v5240_v49, 0.0  ;;  %v5241_v28 = vld [vmem:[#allocation35_spill] sm:$0xff]  ;;  %v5242_v54 = vld [vmem:[#allocation36_spill] sm:$0xff] }
 0x276   :  { %2142 = vst [vmem:[#allocation2 + $0x220] sm:$0xff] %v2014_v26  ;;  %2143 = vst [vmem:[#allocation2 + $0x228] sm:$0xff] %v2015_v10  ;;  %v2040_v44 = vmax.f32 %v5241_v28, 0.0  ;;  %v2041_v46 = vmax.f32 %v5242_v54, 0.0  ;;  %v5243_v2 = vld [vmem:[#allocation37_spill] sm:$0xff]  ;;  %v5244_v59 = vld [vmem:[#allocation38_spill] sm:$0xff] }
 0x277   :  { %2144 = vst [vmem:[#allocation2 + $0x230] sm:$0xff] %v2016_v63  ;;  %2145 = vst [vmem:[#allocation2 + $0x238] sm:$0xff] %v2017_v5  ;;  %v2042_v34 = vmax.f32 %v5243_v2, 0.0  ;;  %v2043_v0 = vmax.f32 %v5244_v59, 0.0  ;;  %v5245_v36 = vld [vmem:[#allocation39_spill] sm:$0xff]  ;;  %v5246_v53 = vld [vmem:[#allocation40_spill] sm:$0xff] }
 0x278   :  { %2146 = vst [vmem:[#allocation2 + $0x240] sm:$0xff] %v2018_v9  ;;  %2147 = vst [vmem:[#allocation2 + $0x248] sm:$0xff] %v2019_v50  ;;  %v2044_v15 = vmax.f32 %v5245_v36, 0.0  ;;  %v2045_v30 = vmax.f32 %v5246_v53, 0.0  ;;  %v5247_v32 = vld [vmem:[#allocation41_spill] sm:$0xff]  ;;  %v5248_v18 = vld [vmem:[#allocation42_spill] sm:$0xff] }
 0x279   :  { %2148 = vst [vmem:[#allocation2 + $0x250] sm:$0xff] %v2020_v48  ;;  %2149 = vst [vmem:[#allocation2 + $0x258] sm:$0xff] %v2021_v41  ;;  %v2046_v23 = vmax.f32 %v5247_v32, 0.0  ;;  %v2047_v55 = vmax.f32 %v5248_v18, 0.0  ;;  %v5249_v60 = vld [vmem:[#allocation43_spill] sm:$0xff]  ;;  %v5250_v39 = vld [vmem:[#allocation44_spill] sm:$0xff] }
 0x27a   :  { %2150 = vst [vmem:[#allocation2 + $0x260] sm:$0xff] %v2022_v19  ;;  %2151 = vst [vmem:[#allocation2 + $0x268] sm:$0xff] %v2023_v8  ;;  %v2048_v56 = vmax.f32 %v5249_v60, 0.0  ;;  %v2049_v57 = vmax.f32 %v5250_v39, 0.0  ;;  %v5251_v12 = vld [vmem:[#allocation45_spill] sm:$0xff]  ;;  %v5252_v25 = vld [vmem:[#allocation46_spill] sm:$0xff] }
 0x27b   :  { %2152 = vst [vmem:[#allocation2 + $0x270] sm:$0xff] %v2024_v61  ;;  %2153 = vst [vmem:[#allocation2 + $0x278] sm:$0xff] %v2025_v1  ;;  %v2050_v11 = vmax.f32 %v5251_v12, 0.0  ;;  %v2051_v13 = vmax.f32 %v5252_v25, 0.0  ;;  %v5253_v37 = vld [vmem:[#allocation50_spill] sm:$0xff]  ;;  %v5254_v10 = vld [vmem:[#allocation51_spill] sm:$0xff] }
 0x27c   :  { %2154 = vst [vmem:[#allocation2 + $0x280] sm:$0xff] %v2026_v16  ;;  %2155 = vst [vmem:[#allocation2 + $0x288] sm:$0xff] %v2027_v21  ;;  %v2052_v26 = vmax.f32 %v5253_v37, 0.0  ;;  %v2053_v63 = vmax.f32 %v5254_v10, 0.0  ;;  %v5255_v5 = vld [vmem:[#allocation53_spill] sm:$0xff]  ;;  %v5256_v50 = vld [vmem:[#allocation55_spill] sm:$0xff] }
 0x27d   :  { %2156 = vst [vmem:[#allocation2 + $0x290] sm:$0xff] %v2028_v20  ;;  %2157 = vst [vmem:[#allocation2 + $0x298] sm:$0xff] %v2029_v22  ;;  %v2054_v9 = vmax.f32 %v5255_v5, 0.0  ;;  %v2055_v48 = vmax.f32 %v5256_v50, 0.0  ;;  %v5257_v41 = vld [vmem:[#allocation58_spill] sm:$0xff]  ;;  %v5258_v8 = vld [vmem:[#allocation59_spill] sm:$0xff] }
 0x27e   :  { %2158 = vst [vmem:[#allocation2 + $0x2a0] sm:$0xff] %v2030_v27  ;;  %2159 = vst [vmem:[#allocation2 + $0x2a8] sm:$0xff] %v2031_v31  ;;  %v2056_v19 = vmax.f32 %v5257_v41, 0.0  ;;  %v2057_v61 = vmax.f32 %v5258_v8, 0.0  ;;  %v5259_v1 = vld [vmem:[#allocation61_spill] sm:$0xff]  ;;  %v5260_v21 = vld [vmem:[#allocation63_spill] sm:$0xff] }
 0x27f   :  { %2160 = vst [vmem:[#allocation2 + $0x2b0] sm:$0xff] %v2032_v42  ;;  %2161 = vst [vmem:[#allocation2 + $0x2b8] sm:$0xff] %v2033_v4  ;;  %v2058_v16 = vmax.f32 %v5259_v1, 0.0  ;;  %v2059_v20 = vmax.f32 %v5260_v21, 0.0  ;;  %v5261_v22 = vld [vmem:[#allocation66_spill] sm:$0xff]  ;;  %v2061_v31 = vmax.f32 %v4457_v6, 0.0 }
 0x280   :  { %2162 = vst [vmem:[#allocation2 + $0x2c0] sm:$0xff] %v2034_v51  ;;  %2163 = vst [vmem:[#allocation2 + $0x2c8] sm:$0xff] %v2035_v62  ;;  %v2060_v27 = vmax.f32 %v5261_v22, 0.0  ;;  %v2062_v38 = vmax.f32 %v4461_v24, 0.0  ;;  %v2063_v42 = vmax.f32 %v4465_v33, 0.0  ;;  %v2064_v40 = vmax.f32 %v4469_v45, 0.0 }
 0x281   :  { %2164 = vst [vmem:[#allocation2 + $0x2d0] sm:$0xff] %v2036_v52  ;;  %2165 = vst [vmem:[#allocation2 + $0x2d8] sm:$0xff] %v2037_v17  ;;  %v2065_v4 = vmax.f32 %v4473_v14, 0.0  ;;  %v5262_v47 = vld [vmem:[#allocation67_spill] sm:$0xff]  ;;  %v5263_v51 = vld [vmem:[#allocation69_spill] sm:$0xff] }
 0x282   :  { %2166 = vst [vmem:[#allocation2 + $0x2e0] sm:$0xff] %v2038_v7  ;;  %2167 = vst [vmem:[#allocation2 + $0x2e8] sm:$0xff] %v2039_v43  ;;  %v2066_v6 = vmax.f32 %v5262_v47, 0.0  ;;  %v2067_v58 = vmax.f32 %v5263_v51, 0.0  ;;  %v5264_v62 = vld [vmem:[#allocation71_spill] sm:$0xff]  ;;  %v5265_v52 = vld [vmem:[#allocation74_spill] sm:$0xff] }
 0x283   :  { %2168 = vst [vmem:[#allocation2 + $0x2f0] sm:$0xff] %v2040_v44  ;;  %2169 = vst [vmem:[#allocation2 + $0x2f8] sm:$0xff] %v2041_v46  ;;  %v2068_v35 = vmax.f32 %v5264_v62, 0.0  ;;  %v2069_v29 = vmax.f32 %v5265_v52, 0.0  ;;  %v5266_v24 = vld [vmem:[#allocation75_spill] sm:$0xff]  ;;  %v5267_v45 = vld [vmem:[#allocation77_spill] sm:$0xff] }
 0x284   :  { %2170 = vst [vmem:[#allocation2 + $0x300] sm:$0xff] %v2042_v34  ;;  %2171 = vst [vmem:[#allocation2 + $0x308] sm:$0xff] %v2043_v0  ;;  %v2070_v33 = vmax.f32 %v5266_v24, 0.0  ;;  %v2071_v14 = vmax.f32 %v5267_v45, 0.0  ;;  %v5268_v17 = vld [vmem:[#allocation79_spill] sm:$0xff] }
 0x285   :  { %2172 = vst [vmem:[#allocation2 + $0x310] sm:$0xff] %v2044_v15  ;;  %2173 = vst [vmem:[#allocation2 + $0x318] sm:$0xff] %v2045_v30  ;;  %v2072_v3 = vmax.f32 %v5268_v17, 0.0 }
 0x286   :  { %2174 = vst [vmem:[#allocation2 + $0x320] sm:$0xff] %v2046_v23  ;;  %2175 = vst [vmem:[#allocation2 + $0x328] sm:$0xff] %v2047_v55 }
 0x287   :  { %2176 = vst [vmem:[#allocation2 + $0x330] sm:$0xff] %v2048_v56  ;;  %2177 = vst [vmem:[#allocation2 + $0x338] sm:$0xff] %v2049_v57 }
 0x288   :  { %2178 = vst [vmem:[#allocation2 + $0x340] sm:$0xff] %v2050_v11  ;;  %2179 = vst [vmem:[#allocation2 + $0x348] sm:$0xff] %v2051_v13 }
 0x289   :  { %2180 = vst [vmem:[#allocation2 + $0x350] sm:$0xff] %v2052_v26  ;;  %2181 = vst [vmem:[#allocation2 + $0x358] sm:$0xff] %v2053_v63 }
 0x28a   :  { %2182 = vst [vmem:[#allocation2 + $0x360] sm:$0xff] %v2054_v9  ;;  %2183 = vst [vmem:[#allocation2 + $0x368] sm:$0xff] %v2055_v48 }
 0x28b   :  { %2184 = vst [vmem:[#allocation2 + $0x370] sm:$0xff] %v2056_v19  ;;  %2185 = vst [vmem:[#allocation2 + $0x378] sm:$0xff] %v2057_v61 }
 0x28c   :  { %2186 = vst [vmem:[#allocation2 + $0x380] sm:$0xff] %v2058_v16  ;;  %2187 = vst [vmem:[#allocation2 + $0x388] sm:$0xff] %v2059_v20 }
 0x28d   :  { %2188 = vst [vmem:[#allocation2 + $0x390] sm:$0xff] %v2060_v27  ;;  %2189 = vst [vmem:[#allocation2 + $0x398] sm:$0xff] %v2061_v31 }
 0x28e   :  { %2190 = vst [vmem:[#allocation2 + $0x3a0] sm:$0xff] %v2062_v38  ;;  %2191 = vst [vmem:[#allocation2 + $0x3a8] sm:$0xff] %v2063_v42 }
 0x28f   :  { %2192 = vst [vmem:[#allocation2 + $0x3b0] sm:$0xff] %v2064_v40  ;;  %2193 = vst [vmem:[#allocation2 + $0x3b8] sm:$0xff] %v2065_v4 }
 0x290   :  { %2194 = vst [vmem:[#allocation2 + $0x3c0] sm:$0xff] %v2066_v6  ;;  %2195 = vst [vmem:[#allocation2 + $0x3c8] sm:$0xff] %v2067_v58 }
 0x291   :  { %2196 = vst [vmem:[#allocation2 + $0x3d0] sm:$0xff] %v2068_v35  ;;  %2197 = vst [vmem:[#allocation2 + $0x3d8] sm:$0xff] %v2069_v29 }
 0x292   :  { %2198 = vst [vmem:[#allocation2 + $0x3e0] sm:$0xff] %v2070_v33  ;;  %2199 = vst [vmem:[#allocation2 + $0x3e8] sm:$0xff] %v2071_v14 }
 0x293   :  { %2200 = vst [vmem:[#allocation2 + $0x3f0] sm:$0xff] %v2072_v3 }
 0x294   :  { %2497 = shalt.err (!%p2494_p4)  }
 0x295   :  { %s2498_s24 = scalar_lea.hbm %s4646_s4, 16384 }
 0x296   :  { %p2499_p5 = scmp.ne.s32.totalorder %s4646_s4, %s2498_s24  ;;  %p2502_p6 = scmp.lt.u32.totalorder %s2498_s24, %s4646_s4 }
 0x298   :  { %p2504_p7 = pnand %p2502_p6, %p2499_p5 }
 0x29a   :  { %2507 = shalt.err (!%p2504_p7)  }
 0x29b   :  { %2212 = dma.vmem_to_hbm [thread:$0]  %s2210_s3, 16384, %s4646_s4, [#allocation5] }
 0x29c   :  { %2508 = dma.done.wait [#allocation5], 16384 }
 0x29d   :  { %2509 = vsyncadd [#allocation5], 4294950912 }
 0x29e   :  { %2217 = vsyncmov [#allocation5] }
 0x2a1   :  { %s2218_s5 = vpop.sfrf %2217 }
 0x2a2   :  { %p2339_p8 = scmp.ne.s32.totalorder %s2218_s5, 0 }
 0x2a4   :  { %2222 = shalt.err (%p2339_p8)  }

</bundles_post_ra>
